<compile_context>
chip_gen: v5e
topology: v5e:2x2
jax: 0.10.0
libtpu: 0.0.40
codegen_flags: <defaults>
</compile_context>

<pallas_src>
import functools

import jax
import jax.numpy as jnp
from jax.experimental import pallas as pl
from jax.experimental.pallas import tpu as pltpu


def _down_kernel(x_ref, w1_ref, b1_ref, w2_ref, b2_ref, mask_ref,
                 out_ref, xpad_ref, ypad_ref, *, H, Wp, Cin, Cmid, Cout):
    """One batch image per grid step.

    x_ref   : (1, H*Wp, 2*Cin)  W-padded input, even/odd W cols packed on lanes
    w*_ref  : (3, 3*C_in, C_out) conv taps; row r = dx*C_in + ci, first axis = dy
              (BatchNorm scale already folded into the weights)
    b*_ref  : (1, C)             folded BatchNorm bias
    mask_ref: (H*Wp, 1)          1.0 for real output columns, 0.0 for junk cols
    out_ref : (1, H*Wp, Cout)    flat output (junk columns sliced off outside)
    xpad_ref: (SCR, 3*Cin)  f32  dx-packed, H-halo-padded pooled image
    ypad_ref: (SCR, 3*Cmid) f32  dx-packed, H-halo-padded conv1 activation

    Index math (read base A0 = 8, Wp % 8 == 0 so all matmul reads are aligned):
      conv1: slab dx is written at rows [Wp+A0-dx, Wp+A0-dx+L); tap dy reads
             rows [A0+dy*Wp, A0+dy*Wp+L), so slab dx of read row A0+dy*Wp+l
             holds pooled[(y+dy-1), x+dx-1] for l = y*Wp + x (wrapper W-pad
             supplies the left/right zero columns, scratch halo rows the
             top/bottom zeros).
      conv2: identical, with write starts Wp+A0+1-dx because the activation's
             columns are in output coordinates (its masked junk columns double
             as the left/right conv padding).
    """
    L = H * Wp
    A0 = 8                           # aligned read-base row (multiple of 8)
    SCR = (H + 2) * Wp + 2 * A0
    HEAD_END = Wp + 2 * A0           # rows [0, HEAD_END) zeroed, then partly overwritten
    TAIL = (H + 1) * Wp              # rows [TAIL, SCR) zeroed, then partly overwritten

    # ---- MaxPool2d((1, 2)): pooled pairs are packed along the lane axis.
    xp = x_ref[0]                                            # (L, 2*Cin)
    pooled = jnp.maximum(xp[:, :Cin], xp[:, Cin:])           # (L, Cin) f32

    # ---- Pack conv1 input: halo-only zeroing, then 3 dx-shifted slab writes.
    xpad_ref[0:HEAD_END, :] = jnp.zeros((HEAD_END, 3 * Cin), jnp.float32)
    xpad_ref[TAIL:SCR, :] = jnp.zeros((SCR - TAIL, 3 * Cin), jnp.float32)
    for dx in range(3):
        s = Wp + A0 - dx
        xpad_ref[s:s + L, dx * Cin:(dx + 1) * Cin] = pooled

    # ---- Conv1 (3x3, pad 1, bias=False): 3 bf16 MXU matmuls (dx folded into K).
    acc = None
    for dy in range(3):
        s = A0 + dy * Wp                                     # multiple of 8
        lhs = xpad_ref[s:s + L, :].astype(jnp.bfloat16)      # (L, 3*Cin)
        d = jnp.dot(lhs, w1_ref[dy], preferred_element_type=jnp.float32)
        acc = d if acc is None else acc + d
    # BN bias + ReLU; zero the junk columns so they act as conv2's W padding.
    y = jnp.maximum(acc + b1_ref[...], 0.0) * mask_ref[...]  # (L, Cmid) f32

    # ---- Pack conv2 input.
    ypad_ref[0:HEAD_END, :] = jnp.zeros((HEAD_END, 3 * Cmid), jnp.float32)
    ypad_ref[TAIL:SCR, :] = jnp.zeros((SCR - TAIL, 3 * Cmid), jnp.float32)
    for dx in range(3):
        s = Wp + A0 + 1 - dx
        ypad_ref[s:s + L, dx * Cmid:(dx + 1) * Cmid] = y

    # ---- Conv2 (3x3, pad 1, bias=False) + BN bias + ReLU.
    acc2 = None
    for dy in range(3):
        s = A0 + dy * Wp
        lhs = ypad_ref[s:s + L, :].astype(jnp.bfloat16)      # (L, 3*Cmid)
        d = jnp.dot(lhs, w2_ref[dy], preferred_element_type=jnp.float32)
        acc2 = d if acc2 is None else acc2 + d
    out_ref[0] = jnp.maximum(acc2 + b2_ref[...], 0.0).astype(out_ref.dtype)


def down_forward(x, w1, bn1, w2, bn2, eps=1e-5):
    """Down.forward: x (N, Cin, H, W) f32 -> (N, Cout, H, W//2) f32.

    w1: (Cmid, Cin, 3, 3), w2: (Cout, Cmid, 3, 3)  (PyTorch OIHW, bias=False)
    bn*: (gamma, beta, running_mean, running_var)  (inference-mode BatchNorm)
    """
    N, Cin, H, W = x.shape
    assert W % 2 == 0, "MaxPool2d((1,2)) path requires even W"
    W2 = W // 2
    Wp = ((W2 + 2 + 7) // 8) * 8          # >= W2+2 and a multiple of 8 (aligned shifts)
    Cmid, Cout = w1.shape[0], w2.shape[0]
    L = H * Wp
    A0 = 8
    SCR = (H + 2) * Wp + 2 * A0

    # Layout plumbing: NCHW -> NHWC, pad W only (left = 1 pooled zero column,
    # right = Wp - W2 - 1 junk columns), pack even/odd W cols on lanes, flatten.
    x_nhwc = jnp.transpose(x, (0, 2, 3, 1)).astype(jnp.float32)
    x_wpad = jnp.pad(x_nhwc, ((0, 0), (0, 0), (2, 2 * (Wp - W2 - 1)), (0, 0)))
    x_flat = x_wpad.reshape(N, H, Wp, 2 * Cin).reshape(N, L, 2 * Cin)

    def fold(w_oihw, bn):
        gamma, beta, mean, var = bn
        scale = gamma / jnp.sqrt(var + eps)
        bias = beta - mean * scale
        w_s = w_oihw * scale[:, None, None, None]            # fold BN scale into weights
        # OIHW -> (kh, kw, Cin, Cout) -> (dy, dx*Cin + ci, Cout), bf16 for the MXU.
        wk = jnp.transpose(w_s, (2, 3, 1, 0)).reshape(
            3, 3 * w_oihw.shape[1], w_oihw.shape[0])
        return wk.astype(jnp.bfloat16), bias.reshape(1, -1).astype(jnp.float32)

    w1_k, b1 = fold(w1, bn1)
    w2_k, b2 = fold(w2, bn2)

    # Static valid-column mask (real output columns x < W2 within each Wp-row).
    mask = jnp.tile(jnp.arange(Wp) < W2, H).astype(jnp.float32).reshape(L, 1)

    kernel = functools.partial(_down_kernel, H=H, Wp=Wp,
                               Cin=Cin, Cmid=Cmid, Cout=Cout)

    out_flat = pl.pallas_call(
        kernel,
        out_shape=jax.ShapeDtypeStruct((N, L, Cout), jnp.float32),
        grid_spec=pltpu.PrefetchScalarGridSpec(
            num_scalar_prefetch=0,
            grid=(N,),
            in_specs=[
                pl.BlockSpec((1, L, 2 * Cin), lambda n: (n, 0, 0)),     # x
                pl.BlockSpec((3, 3 * Cin, Cmid), lambda n: (0, 0, 0)),  # w1 (resident)
                pl.BlockSpec((1, Cmid), lambda n: (0, 0)),              # bn1 bias
                pl.BlockSpec((3, 3 * Cmid, Cout), lambda n: (0, 0, 0)),  # w2 (resident)
                pl.BlockSpec((1, Cout), lambda n: (0, 0)),              # bn2 bias
                pl.BlockSpec((L, 1), lambda n: (0, 0)),                 # column mask
            ],
            out_specs=pl.BlockSpec((1, L, Cout), lambda n: (n, 0, 0)),
            scratch_shapes=[
                pltpu.VMEM((SCR, 3 * Cin), jnp.float32),    # dx-packed pooled input
                pltpu.VMEM((SCR, 3 * Cmid), jnp.float32),   # dx-packed conv1 activation
            ],
        ),
        compiler_params=pltpu.CompilerParams(
            dimension_semantics=("parallel",),
            vmem_limit_bytes=64 * 1024 * 1024),
    )(x_flat, w1_k, b1, w2_k, b2, mask)

    # Drop junk columns, back to NCHW.
    out = out_flat.reshape(N, H, Wp, Cout)[:, :, :W2, :]
    return jnp.transpose(out, (0, 3, 1, 2))


def down_reference(x, w1, bn1, w2, bn2, eps=1e-5):
    """Pure-JAX mirror of the PyTorch Down module (inference-mode BN)."""
    N, Cin, H, W = x.shape
    xp = jnp.max(x.reshape(N, Cin, H, W // 2, 2), axis=-1)   # MaxPool2d((1, 2))

    def conv_bn_relu(inp, w, bn):
        gamma, beta, mean, var = bn
        y = jax.lax.conv_general_dilated(
            inp, w, window_strides=(1, 1), padding="SAME",
            dimension_numbers=("NCHW", "OIHW", "NCHW"))
        scale = (gamma / jnp.sqrt(var + eps))[None, :, None, None]
        shift = (beta - mean * gamma / jnp.sqrt(var + eps))[None, :, None, None]
        return jnp.maximum(y * scale + shift, 0.0)

    return conv_bn_relu(conv_bn_relu(xp, w1, bn1), w2, bn2)


if __name__ == "__main__":
    key = jax.random.PRNGKey(0)
    ks = jax.random.split(key, 12)

    N, Cin, H, W = 2, 4, 16, 16        # input x: (batch, channels, H, W)
    Cmid = Cout = 8                    # DoubleConv(mid=out=8)

    x = jax.random.normal(ks[0], (N, Cin, H, W), jnp.float32)
    w1 = 0.1 * jax.random.normal(ks[1], (Cmid, Cin, 3, 3), jnp.float32)
    w2 = 0.1 * jax.random.normal(ks[2], (Cout, Cmid, 3, 3), jnp.float32)
    bn1 = (1.0 + 0.1 * jax.random.normal(ks[3], (Cmid,), jnp.float32),
           0.1 * jax.random.normal(ks[4], (Cmid,), jnp.float32),
           0.1 * jax.random.normal(ks[5], (Cmid,), jnp.float32),
           1.0 + 0.1 * jnp.abs(jax.random.normal(ks[6], (Cmid,), jnp.float32)))
    bn2 = (1.0 + 0.1 * jax.random.normal(ks[7], (Cout,), jnp.float32),
           0.1 * jax.random.normal(ks[8], (Cout,), jnp.float32),
           0.1 * jax.random.normal(ks[9], (Cout,), jnp.float32),
           1.0 + 0.1 * jnp.abs(jax.random.normal(ks[10], (Cout,), jnp.float32)))

    out = jax.block_until_ready(down_forward(x, w1, bn1, w2, bn2))
    ref = down_reference(x, w1, bn1, w2, bn2)

    assert out.shape == (N, Cout, H, W // 2), out.shape
    assert out.dtype == jnp.float32, out.dtype
    # bf16 MXU matmuls -> looser tolerance than the f32 reference.
    max_err = float(jnp.max(jnp.abs(out - ref)))
    assert jnp.allclose(out, ref, atol=3e-2, rtol=3e-2), max_err

    print("KERNEL_OK")
</pallas_src>

<mosaic_0001>
module attributes {stable_mosaic.version = 11 : i64} {
  func.func @_down_kernel(%arg0: i32, %arg1: memref<1x256x8xf32, #tpu.memory_space<vmem>>, %arg2: memref<3x12x8xbf16, #tpu.memory_space<vmem>>, %arg3: memref<1x8xf32, #tpu.memory_space<vmem>>, %arg4: memref<3x24x8xbf16, #tpu.memory_space<vmem>>, %arg5: memref<1x8xf32, #tpu.memory_space<vmem>>, %arg6: memref<256x1xf32, #tpu.memory_space<vmem>>, %arg7: memref<1x256x8xf32, #tpu.memory_space<vmem>>, %arg8: memref<304x12xf32, #tpu.memory_space<vmem>>, %arg9: memref<304x24xf32, #tpu.memory_space<vmem>>) attributes {dimension_semantics = [#tpu.dimension_semantics<parallel>], iteration_bounds = array<i64: 2>, scalar_prefetch = 0 : i64, scratch_operands = 2 : i64, tpu.core_type = #tpu.core_type<tc>, window_params = [{transform_indices = @transform_0, window_bounds = array<i64: 1, 256, 8>}, {pipeline_mode = #tpu.pipeline_mode<synchronous>, transform_indices = @transform_1, window_bounds = array<i64: 3, 12, 8>}, {pipeline_mode = #tpu.pipeline_mode<synchronous>, transform_indices = @transform_2, window_bounds = array<i64: 1, 8>}, {pipeline_mode = #tpu.pipeline_mode<synchronous>, transform_indices = @transform_3, window_bounds = array<i64: 3, 24, 8>}, {pipeline_mode = #tpu.pipeline_mode<synchronous>, transform_indices = @transform_4, window_bounds = array<i64: 1, 8>}, {pipeline_mode = #tpu.pipeline_mode<synchronous>, transform_indices = @transform_5, window_bounds = array<i64: 256, 1>}, {transform_indices = @transform_6, window_bounds = array<i64: 1, 256, 8>}]} {
    %c0 = arith.constant 0 : index
    %c0_0 = arith.constant 0 : index
    %c0_1 = arith.constant 0 : index
    %0 = vector.load %arg1[%c0, %c0_0, %c0_1] : memref<1x256x8xf32, #tpu.memory_space<vmem>>, vector<1x256x8xf32>
    %1 = vector.shape_cast %0 : vector<1x256x8xf32> to vector<256x8xf32>
    %2 = vector.extract_strided_slice %1 {offsets = [0, 0], sizes = [256, 4], strides = [1, 1]} : vector<256x8xf32> to vector<256x4xf32>
    %3 = vector.extract_strided_slice %1 {offsets = [0, 4], sizes = [256, 4], strides = [1, 1]} : vector<256x8xf32> to vector<256x4xf32>
    %4 = arith.maximumf %2, %3 : vector<256x4xf32>
    %cst = arith.constant 0.000000e+00 : f32
    %5 = vector.broadcast %cst : f32 to vector<32x12xf32>
    %c0_2 = arith.constant 0 : index
    %c0_3 = arith.constant 0 : index
    %6 = vector.load %arg8[%c0_2, %c0_3] : memref<304x12xf32, #tpu.memory_space<vmem>>, vector<32x12xf32>
    tpu.vector_store %arg8[%c0_2, %c0_3], %5 {strides = array<i32>} : memref<304x12xf32, #tpu.memory_space<vmem>>, vector<32x12xf32>,
    %cst_4 = arith.constant 0.000000e+00 : f32
    %7 = vector.broadcast %cst_4 : f32 to vector<32x12xf32>
    %c272 = arith.constant 272 : index
    %c0_5 = arith.constant 0 : index
    %8 = vector.load %arg8[%c272, %c0_5] : memref<304x12xf32, #tpu.memory_space<vmem>>, vector<32x12xf32>
    tpu.vector_store %arg8[%c272, %c0_5], %7 {strides = array<i32>} : memref<304x12xf32, #tpu.memory_space<vmem>>, vector<32x12xf32>,
    %c24 = arith.constant 24 : index
    %c0_6 = arith.constant 0 : index
    %9 = vector.load %arg8[%c24, %c0_6] : memref<304x12xf32, #tpu.memory_space<vmem>>, vector<256x4xf32>
    tpu.vector_store %arg8[%c24, %c0_6], %4 {strides = array<i32>} : memref<304x12xf32, #tpu.memory_space<vmem>>, vector<256x4xf32>,
    %c23 = arith.constant 23 : index
    %c4 = arith.constant 4 : index
    %10 = vector.load %arg8[%c23, %c4] : memref<304x12xf32, #tpu.memory_space<vmem>>, vector<256x4xf32>
    tpu.vector_store %arg8[%c23, %c4], %4 {strides = array<i32>} : memref<304x12xf32, #tpu.memory_space<vmem>>, vector<256x4xf32>,
    %c22 = arith.constant 22 : index
    %c8 = arith.constant 8 : index
    %11 = vector.load %arg8[%c22, %c8] : memref<304x12xf32, #tpu.memory_space<vmem>>, vector<256x4xf32>
    tpu.vector_store %arg8[%c22, %c8], %4 {strides = array<i32>} : memref<304x12xf32, #tpu.memory_space<vmem>>, vector<256x4xf32>,
    %c8_7 = arith.constant 8 : index
    %c0_8 = arith.constant 0 : index
    %12 = vector.load %arg8[%c8_7, %c0_8] : memref<304x12xf32, #tpu.memory_space<vmem>>, vector<256x12xf32>
    %13 = arith.truncf %12 : vector<256x12xf32> to vector<256x12xbf16>
    %c0_9 = arith.constant 0 : index
    %c0_10 = arith.constant 0 : index
    %c0_11 = arith.constant 0 : index
    %14 = vector.load %arg2[%c0_9, %c0_10, %c0_11] : memref<3x12x8xbf16, #tpu.memory_space<vmem>>, vector<1x12x8xbf16>
    %15 = vector.shape_cast %14 : vector<1x12x8xbf16> to vector<12x8xbf16>
    %cst_12 = arith.constant dense<0.000000e+00> : vector<256x8xf32>
    %16 = tpu.matmul %13, %15, %cst_12 {dimension_numbers = #tpu.dot_dimension_numbers<[1], [0], [0], [1], [0, 0, 1, 1], [], []>} : vector<256x12xbf16>, vector<12x8xbf16>, vector<256x8xf32> -> vector<256x8xf32>
    %c24_13 = arith.constant 24 : index
    %c0_14 = arith.constant 0 : index
    %17 = vector.load %arg8[%c24_13, %c0_14] : memref<304x12xf32, #tpu.memory_space<vmem>>, vector<256x12xf32>
    %18 = arith.truncf %17 : vector<256x12xf32> to vector<256x12xbf16>
    %c1 = arith.constant 1 : index
    %c0_15 = arith.constant 0 : index
    %c0_16 = arith.constant 0 : index
    %19 = vector.load %arg2[%c1, %c0_15, %c0_16] : memref<3x12x8xbf16, #tpu.memory_space<vmem>>, vector<1x12x8xbf16>
    %20 = vector.shape_cast %19 : vector<1x12x8xbf16> to vector<12x8xbf16>
    %cst_17 = arith.constant dense<0.000000e+00> : vector<256x8xf32>
    %21 = tpu.matmul %18, %20, %cst_17 {dimension_numbers = #tpu.dot_dimension_numbers<[1], [0], [0], [1], [0, 0, 1, 1], [], []>} : vector<256x12xbf16>, vector<12x8xbf16>, vector<256x8xf32> -> vector<256x8xf32>
    %22 = arith.addf %16, %21 : vector<256x8xf32>
    %c40 = arith.constant 40 : index
    %c0_18 = arith.constant 0 : index
    %23 = vector.load %arg8[%c40, %c0_18] : memref<304x12xf32, #tpu.memory_space<vmem>>, vector<256x12xf32>
    %24 = arith.truncf %23 : vector<256x12xf32> to vector<256x12xbf16>
    %c2 = arith.constant 2 : index
    %c0_19 = arith.constant 0 : index
    %c0_20 = arith.constant 0 : index
    %25 = vector.load %arg2[%c2, %c0_19, %c0_20] : memref<3x12x8xbf16, #tpu.memory_space<vmem>>, vector<1x12x8xbf16>
    %26 = vector.shape_cast %25 : vector<1x12x8xbf16> to vector<12x8xbf16>
    %cst_21 = arith.constant dense<0.000000e+00> : vector<256x8xf32>
    %27 = tpu.matmul %24, %26, %cst_21 {dimension_numbers = #tpu.dot_dimension_numbers<[1], [0], [0], [1], [0, 0, 1, 1], [], []>} : vector<256x12xbf16>, vector<12x8xbf16>, vector<256x8xf32> -> vector<256x8xf32>
    %28 = arith.addf %22, %27 : vector<256x8xf32>
    %c0_22 = arith.constant 0 : index
    %c0_23 = arith.constant 0 : index
    %29 = vector.load %arg3[%c0_22, %c0_23] : memref<1x8xf32, #tpu.memory_space<vmem>>, vector<1x8xf32>
    %30 = vector.broadcast %29 : vector<1x8xf32> to vector<256x8xf32>
    %31 = arith.addf %28, %30 : vector<256x8xf32>
    %cst_24 = arith.constant 0.000000e+00 : f32
    %32 = vector.broadcast %cst_24 : f32 to vector<256x8xf32>
    %33 = arith.maximumf %31, %32 : vector<256x8xf32>
    %c0_25 = arith.constant 0 : index
    %c0_26 = arith.constant 0 : index
    %34 = vector.load %arg6[%c0_25, %c0_26] : memref<256x1xf32, #tpu.memory_space<vmem>>, vector<256x1xf32>
    %35 = vector.broadcast %34 : vector<256x1xf32> to vector<256x8xf32>
    %36 = arith.mulf %33, %35 : vector<256x8xf32>
    %cst_27 = arith.constant 0.000000e+00 : f32
    %37 = vector.broadcast %cst_27 : f32 to vector<32x24xf32>
    %c0_28 = arith.constant 0 : index
    %c0_29 = arith.constant 0 : index
    %38 = vector.load %arg9[%c0_28, %c0_29] : memref<304x24xf32, #tpu.memory_space<vmem>>, vector<32x24xf32>
    tpu.vector_store %arg9[%c0_28, %c0_29], %37 {strides = array<i32>} : memref<304x24xf32, #tpu.memory_space<vmem>>, vector<32x24xf32>,
    %cst_30 = arith.constant 0.000000e+00 : f32
    %39 = vector.broadcast %cst_30 : f32 to vector<32x24xf32>
    %c272_31 = arith.constant 272 : index
    %c0_32 = arith.constant 0 : index
    %40 = vector.load %arg9[%c272_31, %c0_32] : memref<304x24xf32, #tpu.memory_space<vmem>>, vector<32x24xf32>
    tpu.vector_store %arg9[%c272_31, %c0_32], %39 {strides = array<i32>} : memref<304x24xf32, #tpu.memory_space<vmem>>, vector<32x24xf32>,
    %c25 = arith.constant 25 : index
    %c0_33 = arith.constant 0 : index
    %41 = vector.load %arg9[%c25, %c0_33] : memref<304x24xf32, #tpu.memory_space<vmem>>, vector<256x8xf32>
    tpu.vector_store %arg9[%c25, %c0_33], %36 {strides = array<i32>} : memref<304x24xf32, #tpu.memory_space<vmem>>, vector<256x8xf32>,
    %c24_34 = arith.constant 24 : index
    %c8_35 = arith.constant 8 : index
    %42 = vector.load %arg9[%c24_34, %c8_35] : memref<304x24xf32, #tpu.memory_space<vmem>>, vector<256x8xf32>
    tpu.vector_store %arg9[%c24_34, %c8_35], %36 {strides = array<i32>} : memref<304x24xf32, #tpu.memory_space<vmem>>, vector<256x8xf32>,
    %c23_36 = arith.constant 23 : index
    %c16 = arith.constant 16 : index
    %43 = vector.load %arg9[%c23_36, %c16] : memref<304x24xf32, #tpu.memory_space<vmem>>, vector<256x8xf32>
    tpu.vector_store %arg9[%c23_36, %c16], %36 {strides = array<i32>} : memref<304x24xf32, #tpu.memory_space<vmem>>, vector<256x8xf32>,
    %c8_37 = arith.constant 8 : index
    %c0_38 = arith.constant 0 : index
    %44 = vector.load %arg9[%c8_37, %c0_38] : memref<304x24xf32, #tpu.memory_space<vmem>>, vector<256x24xf32>
    %45 = arith.truncf %44 : vector<256x24xf32> to vector<256x24xbf16>
    %c0_39 = arith.constant 0 : index
    %c0_40 = arith.constant 0 : index
    %c0_41 = arith.constant 0 : index
    %46 = vector.load %arg4[%c0_39, %c0_40, %c0_41] : memref<3x24x8xbf16, #tpu.memory_space<vmem>>, vector<1x24x8xbf16>
    %47 = vector.shape_cast %46 : vector<1x24x8xbf16> to vector<24x8xbf16>
    %cst_42 = arith.constant dense<0.000000e+00> : vector<256x8xf32>
    %48 = tpu.matmul %45, %47, %cst_42 {dimension_numbers = #tpu.dot_dimension_numbers<[1], [0], [0], [1], [0, 0, 1, 1], [], []>} : vector<256x24xbf16>, vector<24x8xbf16>, vector<256x8xf32> -> vector<256x8xf32>
    %c24_43 = arith.constant 24 : index
    %c0_44 = arith.constant 0 : index
    %49 = vector.load %arg9[%c24_43, %c0_44] : memref<304x24xf32, #tpu.memory_space<vmem>>, vector<256x24xf32>
    %50 = arith.truncf %49 : vector<256x24xf32> to vector<256x24xbf16>
    %c1_45 = arith.constant 1 : index
    %c0_46 = arith.constant 0 : index
    %c0_47 = arith.constant 0 : index
    %51 = vector.load %arg4[%c1_45, %c0_46, %c0_47] : memref<3x24x8xbf16, #tpu.memory_space<vmem>>, vector<1x24x8xbf16>
    %52 = vector.shape_cast %51 : vector<1x24x8xbf16> to vector<24x8xbf16>
    %cst_48 = arith.constant dense<0.000000e+00> : vector<256x8xf32>
    %53 = tpu.matmul %50, %52, %cst_48 {dimension_numbers = #tpu.dot_dimension_numbers<[1], [0], [0], [1], [0, 0, 1, 1], [], []>} : vector<256x24xbf16>, vector<24x8xbf16>, vector<256x8xf32> -> vector<256x8xf32>
    %54 = arith.addf %48, %53 : vector<256x8xf32>
    %c40_49 = arith.constant 40 : index
    %c0_50 = arith.constant 0 : index
    %55 = vector.load %arg9[%c40_49, %c0_50] : memref<304x24xf32, #tpu.memory_space<vmem>>, vector<256x24xf32>
    %56 = arith.truncf %55 : vector<256x24xf32> to vector<256x24xbf16>
    %c2_51 = arith.constant 2 : index
    %c0_52 = arith.constant 0 : index
    %c0_53 = arith.constant 0 : index
    %57 = vector.load %arg4[%c2_51, %c0_52, %c0_53] : memref<3x24x8xbf16, #tpu.memory_space<vmem>>, vector<1x24x8xbf16>
    %58 = vector.shape_cast %57 : vector<1x24x8xbf16> to vector<24x8xbf16>
    %cst_54 = arith.constant dense<0.000000e+00> : vector<256x8xf32>
    %59 = tpu.matmul %56, %58, %cst_54 {dimension_numbers = #tpu.dot_dimension_numbers<[1], [0], [0], [1], [0, 0, 1, 1], [], []>} : vector<256x24xbf16>, vector<24x8xbf16>, vector<256x8xf32> -> vector<256x8xf32>
    %60 = arith.addf %54, %59 : vector<256x8xf32>
    %c0_55 = arith.constant 0 : index
    %c0_56 = arith.constant 0 : index
    %61 = vector.load %arg5[%c0_55, %c0_56] : memref<1x8xf32, #tpu.memory_space<vmem>>, vector<1x8xf32>
    %62 = vector.broadcast %61 : vector<1x8xf32> to vector<256x8xf32>
    %63 = arith.addf %60, %62 : vector<256x8xf32>
    %cst_57 = arith.constant 0.000000e+00 : f32
    %64 = vector.broadcast %cst_57 : f32 to vector<256x8xf32>
    %65 = arith.maximumf %63, %64 : vector<256x8xf32>
    %c0_58 = arith.constant 0 : index
    %c0_59 = arith.constant 0 : index
    %c0_60 = arith.constant 0 : index
    %66 = vector.load %arg7[%c0_58, %c0_59, %c0_60] : memref<1x256x8xf32, #tpu.memory_space<vmem>>, vector<1x256x8xf32>
    %67 = vector.shape_cast %66 : vector<1x256x8xf32> to vector<256x8xf32>
    %68 = vector.shape_cast %65 : vector<256x8xf32> to vector<1x256x8xf32>
    tpu.vector_store %arg7[%c0_58, %c0_59, %c0_60], %68 {strides = array<i32>} : memref<1x256x8xf32, #tpu.memory_space<vmem>>, vector<1x256x8xf32>,
    return
  }
  func.func @transform_0(%arg0: i32) -> (i32, i32, i32) {
    %c0_i32 = arith.constant 0 : i32
    %c0_i32_0 = arith.constant 0 : i32
    %c0_i32_1 = arith.constant 0 : i32
    return %arg0, %c0_i32, %c0_i32_0 : i32, i32, i32
  }
  func.func @transform_1(%arg0: i32) -> (i32, i32, i32) {
    %c0_i32 = arith.constant 0 : i32
    %c0_i32_0 = arith.constant 0 : i32
    %c0_i32_1 = arith.constant 0 : i32
    %c0_i32_2 = arith.constant 0 : i32
    return %c0_i32, %c0_i32_0, %c0_i32_1 : i32, i32, i32
  }
  func.func @transform_2(%arg0: i32) -> (i32, i32) {
    %c0_i32 = arith.constant 0 : i32
    %c0_i32_0 = arith.constant 0 : i32
    %c0_i32_1 = arith.constant 0 : i32
    return %c0_i32, %c0_i32_0 : i32, i32
  }
  func.func @transform_3(%arg0: i32) -> (i32, i32, i32) {
    %c0_i32 = arith.constant 0 : i32
    %c0_i32_0 = arith.constant 0 : i32
    %c0_i32_1 = arith.constant 0 : i32
    %c0_i32_2 = arith.constant 0 : i32
    return %c0_i32, %c0_i32_0, %c0_i32_1 : i32, i32, i32
  }
  func.func @transform_4(%arg0: i32) -> (i32, i32) {
    %c0_i32 = arith.constant 0 : i32
    %c0_i32_0 = arith.constant 0 : i32
    %c0_i32_1 = arith.constant 0 : i32
    return %c0_i32, %c0_i32_0 : i32, i32
  }
  func.func @transform_5(%arg0: i32) -> (i32, i32) {
    %c0_i32 = arith.constant 0 : i32
    %c0_i32_0 = arith.constant 0 : i32
    %c0_i32_1 = arith.constant 0 : i32
    return %c0_i32, %c0_i32_0 : i32, i32
  }
  func.func @transform_6(%arg0: i32) -> (i32, i32, i32) {
    %c0_i32 = arith.constant 0 : i32
    %c0_i32_0 = arith.constant 0 : i32
    %c0_i32_1 = arith.constant 0 : i32
    return %arg0, %c0_i32, %c0_i32_0 : i32, i32, i32
  }
}

</mosaic_0001>

<bundles_post_ra>
// kernel: tpu_custom_call.1
= control target key start
LH: loop header
LB: loop body
LE: loop exit
PB: predicated region body
PF: predicated region fallthrough
CT: control target
= control target key end

     0   :  { %s2852_s21 = smov 0   ;;  %s3884_s0 = inlined_call_operand.vmem [shape: f32[2,256,8], index: 0, kind: input, shape index: {}]   ;;  %s3885_s1 = inlined_call_operand.vmem [shape: bf16[3,12,8], index: 1, kind: input, shape index: {}]   ;;  %s3886_s2 = inlined_call_operand.vmem [shape: f32[1,8], index: 2, kind: input, shape index: {}]   ;;  %s3887_s3 = inlined_call_operand.vmem [shape: bf16[3,24,8], index: 3, kind: input, shape index: {}]   ;;  %s3888_s4 = inlined_call_operand.vmem [shape: f32[1,8], index: 4, kind: input, shape index: {}]   ;;  %s3889_s5 = inlined_call_operand.vmem [shape: f32[256,1], index: 5, kind: input, shape index: {}]   ;;  %s3890_s6 = inlined_call_operand.vmem [shape: f32[2,256,8], index: 6, kind: output, shape index: {}]  }
   0x1 LB: > { %s2631_s22 = sadd.s32 4294967295, %s2809_s21   ;;  %p2635_p0 = scmp.ge.s32.totalorder %s2809_s21, 1  ;;  %s2809_s21 = sphi %s2852_s21, %s16_s21  }
   0x2   : > { %p212_p1 = scmp.lt.s32.totalorder %s2809_s21, 3 }
   0x4   : > { %p213_p2 = pnand %p2635_p0, %p212_p1 }
   0x5   : > { %p242_p3 = scmp.lt.s32.totalorder (!%p213_p2), %s2631_s22, 1  ;;  %s2811_s27 = smov (!%p213_p2), 124  }
   0x6   : > { %216 = sbr.rel (%p213_p2) target bundleno = 1543 (0x607), region = 44  ;;  %s2812_s28 = smov (!%p213_p2), 4  }
   0x7   : > { %s2813_s29 = smov (!%p213_p2), 8   ;;  %s2816_s18 = smov (!%p213_p2), 16  }
   0xb   : > { %s3892_s22 = smov (!%p242_p3, %s2631_s22), 1  ;;  %vm454_vm0 = vcmask 31744   ;;  %vm615_vm1 = vcmask 64544   ;;  %v2644_v49 = vld [vmem:[%s3885_s1 + $0x8] sm:$0xf]  ;;  %vm886_vm2 = vcmask 1045504  }
   0xc   : > { %s2772_s23 = sshll.u32 %s3892_s22, 8  ;;  %v2775_v50 = vld [vmem:[%s3885_s1 + $0x8] sm:$0x30]  ;;  %vm744_vm3 = vcmask 97344   ;;  %vm445_vm4 = vcmask 97280   ;;  %vm1599_vm5 = vcmask 195584  }
   0xd   : > { %s2868_s26 = scalar_lea.vmem %s3884_s0, %s2772_s23  ;;  %v2645_v51 = vor.u32 %v2775_v50, %v2644_v49  ;;  %vm1608_vm6 = vcmask 64512   ;;  %vm2046_vm7 = vcmask 1043456   ;;  %vm1769_vm8 = vcmask 130112   ;;  %s3598_s7 = scalar_lea.vmem %s3890_s6, %s2772_s23 }
   0xe   : > { %v270_v0 = vld [vmem:[%s2868_s26 + $0x88] sm:$0xff]  ;;  %v268_v1 = vld [vmem:[%s2868_s26 + $0x78] sm:$0xff]  ;;  %v271_v3 = vld [vmem:[%s2868_s26 + $0x90] sm:$0xff]  ;;  %vm1898_vm9 = vcmask 195712  }
   0xf   : > { %351 = vrot.lane.b32.xlu1 %v270_v0, %s2811_s27  ;;  %347 = vrot.lane.b32.xlu0 %v268_v1, %s2811_s27  ;;  %v272_v2 = vld [vmem:[%s2868_s26 + $0x98] sm:$0xff]  ;;  %v269_v4 = vld [vmem:[%s2868_s26 + $0x80] sm:$0xff]  ;;  %v888_v52 = vsel %vm886_vm2, %v2645_v51, 0 }
  0x10   : > { %355 = vrot.lane.b32.xlu2 %v272_v2, %s2811_s27  ;;  %v273_v5 = vld [vmem:[%s2868_s26 + $0xa0] sm:$0xff]  ;;  %v274_v6 = vld [vmem:[%s2868_s26 + $0xa8] sm:$0xff]  ;;  %v275_v7 = vld [vmem:[%s2868_s26 + $0xb0] sm:$0xff]  ;;  %2780 = vmatpush.bf16.msra.mxu2 %v888_v52 }
  0x11   : > { %v267_v8 = vld [vmem:[%s2868_s26 + $0x70] sm:$0xff]  ;;  %v276_v9 = vld [vmem:[%s2868_s26 + $0xb8] sm:$0xff]  ;;  %v277_v10 = vld [vmem:[%s2868_s26 + $0xc0] sm:$0xff]  ;;  %897 = vmatpush.bf16.msra.mxu0 %v888_v52 }
  0x12   : > { %v278_v11 = vld [vmem:[%s2868_s26 + $0xc8] sm:$0xff]  ;;  %v2894_v12 = vld [vmem:[%s2868_s26 + $0xd0] sm:$0xff]  ;;  %v2915_v27 = vld [vmem:[%s2868_s26 + $0xe0] sm:$0xff] }
  0x13   : > { %v2924_v30 = vld [vmem:[%s2868_s26 + $0xd8] sm:$0xff]  ;;  %v283_v35 = vld [vmem:[%s2868_s26 + $0xf0] sm:$0xff]  ;;  %v2941_v38 = vld [vmem:[%s2868_s26 + $0xe8] sm:$0xff] }
  0x14   : > { %v2949_v41 = vld [vmem:[%s2868_s26 + $0x8] sm:$0xff]  ;;  %v2955_v43 = vld [vmem:[%s2868_s26 + $0x18] sm:$0xff]  ;;  %v2972_v46 = vld [vmem:[%s2868_s26 + $0x10] sm:$0xff] }
  0x15   : > { %v2962_v45 = vld [vmem:[%s2868_s26 + $0xf8] sm:$0xff]  ;;  %v2993_v56 = vld [vmem:[%s2868_s26 + $0x20] sm:$0xff] }
  0x17   : > { %353 = vrot.lane.b32.xlu1 %v271_v3, %s2811_s27  ;;  %349 = vrot.lane.b32.xlu0 %v269_v4, %s2811_s27 }
  0x18   : > { %357 = vrot.lane.b32.xlu2 %v273_v5, %s2811_s27 }
  0x1f   : > { %359 = vrot.lane.b32.xlu0 %v274_v6, %s2811_s27  ;;  %361 = vrot.lane.b32.xlu1 %v275_v7, %s2811_s27 }
  0x20   : > { %345 = vrot.lane.b32.xlu2 %v267_v8, %s2811_s27 }
  0x27   : > { %363 = vrot.lane.b32.xlu1 %v276_v9, %s2811_s27 }
  0x28   : > { %365 = vrot.lane.b32.xlu2 %v277_v10, %s2811_s27 }
  0x2f   : > { %367 = vrot.lane.b32.xlu1 %v278_v11, %s2811_s27 }
  0x30   : > { %369 = vrot.lane.b32.xlu2 %v2894_v12, %s2811_s27 }
  0x6a   : > { %v356_v13 = vpop.permute.xlu2 %355 }
  0x6b   : > { %v432_v14 = vmax.f32 %v272_v2, %v356_v13 }
  0x6d   : > { %474 = vst.msk [vmem:[#allocation2 + $0xb0] sm:$0xff] %vm454_vm0, %v432_v14 }
  0x72   : > { %v358_v15 = vpop.permute.xlu2 %357 }
  0x73   : > { %v433_v16 = vmax.f32 %v273_v5, %v358_v15 }
  0x75   : > { %475 = vst.msk [vmem:[#allocation2 + $0xb8] sm:$0xff] %vm454_vm0, %v433_v16 }
  0x7a   : > { %v346_v31 = vpop.permute.xlu2 %345 }
  0x7b   : > { %v2930_v33 = vmax.f32 %v267_v8, %v346_v31 }
  0x7d   : > { %469 = vst.msk [vmem:[#allocation2 + $0x88] sm:$0xff] %vm454_vm0, %v2930_v33 }
  0x81   : > { %v352_v17 = vpop.permute.xlu1 %351  ;;  %v348_v18 = vpop.permute.xlu0 %347 }
  0x82   : > { %v430_v19 = vmax.f32 %v270_v0, %v352_v17  ;;  %v2901_v20 = vmax.f32 %v268_v1, %v348_v18  ;;  %v366_v36 = vpop.permute.xlu2 %365  ;;  %v3008_v0 = vld [vmem:[%s2868_s26 + $0x28] sm:$0xff]  ;;  %v2814_v1 = vmov 0.0  }
  0x83   : > { %v437_v37 = vmax.f32 %v277_v10, %v366_v36  ;;  %450 = vst.msk [vmem:[#allocation2 + $0x110] sm:$0xff] %vm445_vm4, %v2814_v1  ;;  %v3082_v36 = vld [vmem:[%s2868_s26 + $0x40] sm:$0xff] }
  0x84   : > { %472 = vst.msk [vmem:[#allocation2 + $0xa0] sm:$0xff] %vm454_vm0, %v430_v19  ;;  %549 = vrot.lane.b32.xlu0 %v2901_v20, %s2812_s28  ;;  %553 = vrot.lane.b32.xlu2 %v430_v19, %s2812_s28 }
  0x85   : > { %470 = vst.msk [vmem:[#allocation2 + $0x90] sm:$0xff] %vm454_vm0, %v2901_v20 }
  0x86   : > { %479 = vst.msk [vmem:[#allocation2 + $0xd8] sm:$0xff] %vm454_vm0, %v437_v37 }
  0x87   : > { %447 = vst.msk [vmem:[#allocation2 + $0x8] sm:$0xff] %vm445_vm4, %v2814_v1 }
  0x88   : > { %448 = vst.msk [vmem:[#allocation2 + $0x10] sm:$0xff] %vm445_vm4, %v2814_v1 }
  0x89   : > { %v354_v21 = vpop.permute.xlu1 %353  ;;  %v350_v22 = vpop.permute.xlu0 %349  ;;  %449 = vst.msk [vmem:[#allocation2 + $0x18] sm:$0xff] %vm445_vm4, %v2814_v1 }
  0x8a   : > { %v431_v23 = vmax.f32 %v271_v3, %v354_v21  ;;  %v429_v24 = vmax.f32 %v269_v4, %v350_v22  ;;  %v370_v42 = vpop.permute.xlu2 %369  ;;  %451 = vst.msk [vmem:[#allocation2 + $0x118] sm:$0xff] %vm445_vm4, %v2814_v1 }
  0x8b   : > { %v439_v44 = vmax.f32 %v2894_v12, %v370_v42  ;;  %452 = vst.msk [vmem:[#allocation2 + $0x120] sm:$0xff] %vm445_vm4, %v2814_v1 }
  0x8c   : > { %473 = vst.msk [vmem:[#allocation2 + $0xa8] sm:$0xff] %vm454_vm0, %v431_v23  ;;  %555 = vrot.lane.b32.xlu0 %v431_v23, %s2812_s28  ;;  %551 = vrot.lane.b32.xlu1 %v429_v24, %s2812_s28 }
  0x8d   : > { %471 = vst.msk [vmem:[#allocation2 + $0x98] sm:$0xff] %vm454_vm0, %v429_v24  ;;  %682 = vrot.lane.b32.xlu2 %v430_v19, %s2813_s29 }
  0x8e   : > { %481 = vst.msk [vmem:[#allocation2 + $0xe8] sm:$0xff] %vm454_vm0, %v439_v44 }
  0x8f   : > { %1601 = vst.msk [vmem:[#allocation3 + $0x8] sm:$0xff] %vm1599_vm5, %v2814_v1 }
  0x90   : > { %1602 = vst.msk [vmem:[#allocation3 + $0x10] sm:$0xff] %vm1599_vm5, %v2814_v1 }
  0x91   : > { %v360_v25 = vpop.permute.xlu0 %359  ;;  %v362_v26 = vpop.permute.xlu1 %361  ;;  %1603 = vst.msk [vmem:[#allocation3 + $0x18] sm:$0xff] %vm1599_vm5, %v2814_v1 }
  0x92   : > { %v434_v28 = vmax.f32 %v274_v6, %v360_v25  ;;  %v435_v29 = vmax.f32 %v275_v7, %v362_v26  ;;  %1604 = vst.msk [vmem:[#allocation3 + $0x110] sm:$0xff] %vm1599_vm5, %v2814_v1 }
  0x93   : > { %1605 = vst.msk [vmem:[#allocation3 + $0x118] sm:$0xff] %vm1599_vm5, %v2814_v1 }
  0x94   : > { %684 = vrot.lane.b32.xlu0 %v431_v23, %s2813_s29  ;;  %680 = vrot.lane.b32.xlu1 %v429_v24, %s2813_s29  ;;  %476 = vst.msk [vmem:[#allocation2 + $0xc0] sm:$0xff] %vm454_vm0, %v434_v28  ;;  %v3056_v23 = vld [vmem:[%s2868_s26 + $0x30] sm:$0xff] }
  0x95   : > { %373 = vrot.lane.b32.xlu2 %v2915_v27, %s2811_s27  ;;  %477 = vst.msk [vmem:[#allocation2 + $0xc8] sm:$0xff] %vm454_vm0, %v435_v29 }
  0x96   : > { %1606 = vst.msk [vmem:[#allocation3 + $0x120] sm:$0xff] %vm1599_vm5, %v2814_v1 }
  0x99   : > { %v364_v32 = vpop.permute.xlu1 %363 }
  0x9a   : > { %v436_v34 = vmax.f32 %v276_v9, %v364_v32 }
  0x9c   : > { %557 = vrot.lane.b32.xlu0 %v432_v14, %s2812_s28  ;;  %371 = vrot.lane.b32.xlu1 %v2924_v30, %s2811_s27  ;;  %478 = vst.msk [vmem:[#allocation2 + $0xd0] sm:$0xff] %vm454_vm0, %v436_v34 }
  0x9d   : > { %686 = vrot.lane.b32.xlu2 %v432_v14, %s2813_s29 }
  0xa1   : > { %v368_v39 = vpop.permute.xlu1 %367 }
  0xa2   : > { %v438_v40 = vmax.f32 %v278_v11, %v368_v39  ;;  %v3029_v11 = vld [vmem:[%s2868_s26] sm:$0xff] }
  0xa4   : > { %688 = vrot.lane.b32.xlu0 %v433_v16, %s2813_s29  ;;  %559 = vrot.lane.b32.xlu1 %v433_v16, %s2812_s28  ;;  %480 = vst.msk [vmem:[#allocation2 + $0xe0] sm:$0xff] %vm454_vm0, %v438_v40 }
  0xa5   : > { %377 = vrot.lane.b32.xlu2 %v283_v35, %s2811_s27 }
  0xac   : > { %375 = vrot.lane.b32.xlu1 %v2941_v38, %s2811_s27  ;;  %561 = vrot.lane.b32.xlu0 %v434_v28, %s2812_s28 }
  0xad   : > { %690 = vrot.lane.b32.xlu2 %v434_v28, %s2813_s29 }
  0xb4   : > { %563 = vrot.lane.b32.xlu1 %v435_v29, %s2812_s28  ;;  %319 = vrot.lane.b32.xlu0 %v2949_v41, %s2811_s27 }
  0xb5   : > { %323 = vrot.lane.b32.xlu2 %v2955_v43, %s2811_s27 }
  0xbc   : > { %379 = vrot.lane.b32.xlu1 %v2962_v45, %s2811_s27  ;;  %692 = vrot.lane.b32.xlu0 %v435_v29, %s2813_s29 }
  0xbd   : > { %694 = vrot.lane.b32.xlu2 %v436_v34, %s2813_s29 }
  0xc4   : > { %565 = vrot.lane.b32.xlu0 %v436_v34, %s2812_s28  ;;  %567 = vrot.lane.b32.xlu1 %v437_v37, %s2812_s28 }
  0xc5   : > { %698 = vrot.lane.b32.xlu2 %v438_v40, %s2813_s29 }
  0xcc   : > { %696 = vrot.lane.b32.xlu0 %v437_v37, %s2813_s29  ;;  %321 = vrot.lane.b32.xlu1 %v2972_v46, %s2811_s27 }
  0xd4   : > { %569 = vrot.lane.b32.xlu0 %v438_v40, %s2812_s28  ;;  %571 = vrot.lane.b32.xlu1 %v439_v44, %s2812_s28 }
  0xdc   : > { %700 = vrot.lane.b32.xlu0 %v439_v44, %s2813_s29 }
  0xde   : > { %v554_v47 = vpop.permute.xlu2 %553 }
  0xdf   : > { %633 = vst.msk [vmem:[#allocation2 + $0x9f] sm:$0xff] %vm615_vm1, %v554_v47 }
  0xe7   : > { %v683_v48 = vpop.permute.xlu2 %682 }
  0xef   : > { %v374_v53 = vpop.permute.xlu2 %373 }
  0xf0   : > { %v441_v54 = vmax.f32 %v2915_v27, %v374_v53  ;;  %v3069_v27 = vld [vmem:[%s2868_s26 + $0x38] sm:$0xff] }
  0xf2   : > { %483 = vst.msk [vmem:[#allocation2 + $0xf8] sm:$0xff] %vm454_vm0, %v441_v54  ;;  %575 = vrot.lane.b32.xlu0 %v441_v54, %s2812_s28 }
  0xf6   : > { %v550_v55 = vpop.permute.xlu0 %549 }
  0xf7   : > { %631 = vst.msk [vmem:[#allocation2 + $0x8f] sm:$0xff] %vm615_vm1, %v550_v55  ;;  %v687_v57 = vpop.permute.xlu2 %686 }
  0xfa   : > { %325 = vrot.lane.b32.xlu0 %v2993_v56, %s2811_s27 }
  0xfe   : > { %v552_v58 = vpop.permute.xlu1 %551  ;;  %v556_v59 = vpop.permute.xlu0 %555 }
  0xff   : > { %632 = vst.msk [vmem:[#allocation2 + $0x97] sm:$0xff] %vm615_vm1, %v552_v58  ;;  %v378_v60 = vpop.permute.xlu2 %377 }
 0x100   : > { %762 = vst.msk [vmem:[#allocation2 + $0x9e] sm:$0xff] %vm744_vm3, %v683_v48  ;;  %v2999_v61 = vmax.f32 %v283_v35, %v378_v60 }
 0x101   : > { %634 = vst.msk [vmem:[#allocation2 + $0xa7] sm:$0xff] %vm615_vm1, %v556_v59 }
 0x102   : > { %485 = vst.msk [vmem:[#allocation2 + $0x108] sm:$0xff] %vm454_vm0, %v2999_v61  ;;  %579 = vrot.lane.b32.xlu0 %v2999_v61, %s2812_s28 }
 0x106   : > { %v681_v62 = vpop.permute.xlu1 %680  ;;  %v685_v63 = vpop.permute.xlu0 %684 }
 0x107   : > { %761 = vst.msk [vmem:[#allocation2 + $0x96] sm:$0xff] %vm744_vm3, %v681_v62  ;;  %v691_v8 = vpop.permute.xlu2 %690 }
 0x108   : > { %763 = vst.msk [vmem:[#allocation2 + $0xa6] sm:$0xff] %vm744_vm3, %v685_v63 }
 0x10a   : > { %327 = vrot.lane.b32.xlu0 %v3008_v0, %s2811_s27 }
 0x10e   : > { %v372_v2 = vpop.permute.xlu1 %371  ;;  %v558_v3 = vpop.permute.xlu0 %557  ;;  %v795_v4 = vld [vmem:[#allocation2 + $0x98] sm:$0xff] }
 0x10f   : > { %v440_v5 = vmax.f32 %v2924_v30, %v372_v2  ;;  %635 = vst.msk [vmem:[#allocation2 + $0xaf] sm:$0xff] %vm615_vm1, %v558_v3  ;;  %v796_v6 = vld [vmem:[#allocation2 + $0xa0] sm:$0xff]  ;;  %v324_v17 = vpop.permute.xlu2 %323 }
 0x110   : > { %764 = vst.msk [vmem:[#allocation2 + $0xae] sm:$0xff] %vm744_vm3, %v687_v57  ;;  %v3017_v7 = vpack.c.bf16 %v796_v6, %v795_v4  ;;  %v416_v19 = vmax.f32 %v2955_v43, %v324_v17  ;;  %v3137_v4 = vld [vmem:[%s2868_s26 + $0x50] sm:$0xff]  ;;  %v3161_v17 = vld [vmem:[%s2868_s26 + $0x58] sm:$0xff] }
 0x111   : > { %482 = vst.msk [vmem:[#allocation2 + $0xf0] sm:$0xff] %vm454_vm0, %v440_v5  ;;  %573 = vrot.lane.b32.xlu2 %v440_v5, %s2812_s28  ;;  %702 = vrot.lane.b32.xlu1 %v440_v5, %s2813_s29  ;;  %v3141_v5 = vld [vmem:[%s2868_s26 + $0x48] sm:$0xff] }
 0x112   : > { %2654 = vmatmul.msk.bf16.vlgmr.msra.gmra.mxu2 %vm445_vm4, %v3017_v7  ;;  %458 = vst.msk [vmem:[#allocation2 + $0x30] sm:$0xff] %vm454_vm0, %v416_v19 }
 0x116   : > { %v560_v9 = vpop.permute.xlu1 %559  ;;  %v689_v10 = vpop.permute.xlu0 %688 }
 0x117   : > { %636 = vst.msk [vmem:[#allocation2 + $0xb7] sm:$0xff] %vm615_vm1, %v560_v9  ;;  %v797_v12 = vld [vmem:[#allocation2 + $0xa8] sm:$0xff]  ;;  %v695_v30 = vpop.permute.xlu2 %694 }
 0x118   : > { %765 = vst.msk [vmem:[#allocation2 + $0xb6] sm:$0xff] %vm744_vm3, %v689_v10 }
 0x119   : > { %317 = vrot.lane.b32.xlu1 %v3029_v11, %s2811_s27  ;;  %704 = vrot.lane.b32.xlu2 %v441_v54, %s2813_s29 }
 0x11e   : > { %v376_v13 = vpop.permute.xlu1 %375  ;;  %v562_v14 = vpop.permute.xlu0 %561 }
 0x11f   : > { %v442_v15 = vmax.f32 %v2941_v38, %v376_v13  ;;  %637 = vst.msk [vmem:[#allocation2 + $0xbf] sm:$0xff] %vm615_vm1, %v562_v14  ;;  %v798_v16 = vld [vmem:[#allocation2 + $0xb0] sm:$0xff] }
 0x120   : > { %v3045_v18 = vpack.c.bf16 %v798_v16, %v797_v12  ;;  %766 = vst.msk [vmem:[#allocation2 + $0xbe] sm:$0xff] %vm744_vm3, %v691_v8 }
 0x121   : > { %484 = vst.msk [vmem:[#allocation2 + $0x100] sm:$0xff] %vm454_vm0, %v442_v15  ;;  %706 = vrot.lane.b32.xlu1 %v442_v15, %s2813_s29  ;;  %577 = vrot.lane.b32.xlu2 %v442_v15, %s2812_s28 }
 0x122   : > { %2655 = vmatmul.msk.bf16.gmra.mxu2 %vm445_vm4, %v3045_v18 }
 0x126   : > { %v564_v21 = vpop.permute.xlu1 %563  ;;  %v320_v22 = vpop.permute.xlu0 %319 }
 0x127   : > { %638 = vst.msk [vmem:[#allocation2 + $0xc7] sm:$0xff] %vm615_vm1, %v564_v21  ;;  %v3060_v24 = vmax.f32 %v2949_v41, %v320_v22  ;;  %v799_v29 = vld [vmem:[#allocation2 + $0xb8] sm:$0xff]  ;;  %v699_v41 = vpop.permute.xlu2 %698 }
 0x129   : > { %456 = vst.msk [vmem:[#allocation2 + $0x20] sm:$0xff] %vm454_vm0, %v3060_v24  ;;  %329 = vrot.lane.b32.xlu1 %v3056_v23, %s2811_s27  ;;  %708 = vrot.lane.b32.xlu2 %v2999_v61, %s2813_s29 }
 0x12e   : > { %v380_v25 = vpop.permute.xlu1 %379  ;;  %v693_v26 = vpop.permute.xlu0 %692 }
 0x12f   : > { %v444_v28 = vmax.f32 %v2962_v45, %v380_v25  ;;  %767 = vst.msk [vmem:[#allocation2 + $0xc6] sm:$0xff] %vm744_vm3, %v693_v26  ;;  %v2776_v25 = vld [vmem:[%s3885_s1 + $0x10] sm:$0x30] }
 0x131   : > { %486 = vst.msk [vmem:[#allocation2 + $0x110] sm:$0xff] %vm454_vm0, %v444_v28  ;;  %710 = vrot.lane.b32.xlu0 %v444_v28, %s2813_s29  ;;  %331 = vrot.lane.b32.xlu1 %v3069_v27, %s2811_s27 }
 0x132   : > { %581 = vrot.lane.b32.xlu2 %v444_v28, %s2812_s28  ;;  %v3184_v28 = vld [vmem:[%s2868_s26 + $0x68] sm:$0xff] }
 0x136   : > { %v566_v31 = vpop.permute.xlu0 %565  ;;  %v800_v32 = vld [vmem:[#allocation2 + $0xc0] sm:$0xff]  ;;  %v568_v34 = vpop.permute.xlu1 %567 }
 0x137   : > { %639 = vst.msk [vmem:[#allocation2 + $0xcf] sm:$0xff] %vm615_vm1, %v566_v31  ;;  %v3079_v35 = vpack.c.bf16 %v800_v32, %v799_v29 }
 0x138   : > { %640 = vst.msk [vmem:[#allocation2 + $0xd7] sm:$0xff] %vm615_vm1, %v568_v34 }
 0x139   : > { %2656 = vmatmul.msk.bf16.gmra.mxu2 %vm445_vm4, %v3079_v35  ;;  %768 = vst.msk [vmem:[#allocation2 + $0xce] sm:$0xff] %vm744_vm3, %v695_v30  ;;  %521 = vrot.lane.b32.xlu0 %v3060_v24, %s2812_s28 }
 0x13a   : > { %333 = vrot.lane.b32.xlu2 %v3082_v36, %s2811_s27 }
 0x13e   : > { %v697_v37 = vpop.permute.xlu0 %696  ;;  %v322_v38 = vpop.permute.xlu1 %321 }
 0x13f   : > { %769 = vst.msk [vmem:[#allocation2 + $0xd6] sm:$0xff] %vm744_vm3, %v697_v37  ;;  %v415_v39 = vmax.f32 %v2972_v46, %v322_v38  ;;  %v2664_v37 = vld [vmem:[%s3885_s1] sm:$0xf]  ;;  %v2774_v38 = vld [vmem:[%s3885_s1] sm:$0x30] }
 0x140   : > { %v801_v40 = vld [vmem:[#allocation2 + $0xc8] sm:$0xff] }
 0x141   : > { %457 = vst.msk [vmem:[#allocation2 + $0x28] sm:$0xff] %vm454_vm0, %v415_v39  ;;  %523 = vrot.lane.b32.xlu1 %v415_v39, %s2812_s28 }
 0x142   : > { %525 = vrot.lane.b32.xlu2 %v416_v19, %s2812_s28 }
 0x146   : > { %v570_v42 = vpop.permute.xlu0 %569  ;;  %v802_v43 = vld [vmem:[#allocation2 + $0xd0] sm:$0xff]  ;;  %v572_v44 = vpop.permute.xlu1 %571 }
 0x147   : > { %641 = vst.msk [vmem:[#allocation2 + $0xdf] sm:$0xff] %vm615_vm1, %v570_v42  ;;  %v3098_v45 = vpack.c.bf16 %v802_v43, %v801_v40  ;;  %v2665_v40 = vor.u32 %v2774_v38, %v2664_v37  ;;  %v1378_v37 = vld [vmem:[%s3889_s5 + $0x18] sm:$0xff] }
 0x148   : > { %642 = vst.msk [vmem:[#allocation2 + $0xe7] sm:$0xff] %vm615_vm1, %v572_v44 }
 0x149   : > { %2657 = vmatmul.msk.bf16.gmra.mxu2 %vm445_vm4, %v3098_v45  ;;  %770 = vst.msk [vmem:[#allocation2 + $0xde] sm:$0xff] %vm744_vm3, %v699_v41  ;;  %652 = vrot.lane.b32.xlu1 %v415_v39, %s2813_s29  ;;  %v988_v42 = vsel %vm886_vm2, %v2665_v40, 0 }
 0x14a   : > { %654 = vrot.lane.b32.xlu2 %v416_v19, %s2813_s29  ;;  %v265_v19 = vld [vmem:[%s2868_s26 + $0x60] sm:$0xff]  ;;  %997 = vmatpush.bf16.msra.mxu1 %v988_v42 }
 0x14b   : > { %2781 = vmatpush.bf16.msra.mxu3 %v988_v42 }
 0x14e   : > { %v701_v46 = vpop.permute.xlu0 %700 }
 0x14f   : > { %771 = vst.msk [vmem:[#allocation2 + $0xe6] sm:$0xff] %vm744_vm3, %v701_v46 }
 0x150   : > { %v803_v47 = vld [vmem:[#allocation2 + $0xd8] sm:$0xff] }
 0x156   : > { %v804_v48 = vld [vmem:[#allocation2 + $0xe0] sm:$0xff] }
 0x157   : > { %v3107_v49 = vpack.c.bf16 %v804_v48, %v803_v47 }
 0x159   : > { %2658 = vmatmul.msk.bf16.gmra.mxu2 %vm445_vm4, %v3107_v49 }
 0x164   : > { %v576_v50 = vpop.permute.xlu0 %575 }
 0x165   : > { %644 = vst.msk [vmem:[#allocation2 + $0xf7] sm:$0xff] %vm615_vm1, %v576_v50 }
 0x16b   : > { %v574_v51 = vpop.permute.xlu2 %573 }
 0x16c   : > { %643 = vst.msk [vmem:[#allocation2 + $0xef] sm:$0xff] %vm615_vm1, %v574_v51  ;;  %v326_v52 = vpop.permute.xlu0 %325 }
 0x16d   : > { %v417_v53 = vmax.f32 %v2993_v56, %v326_v52 }
 0x16f   : > { %459 = vst.msk [vmem:[#allocation2 + $0x38] sm:$0xff] %vm454_vm0, %v417_v53  ;;  %527 = vrot.lane.b32.xlu0 %v417_v53, %s2812_s28 }
 0x173   : > { %v705_v54 = vpop.permute.xlu2 %704 }
 0x174   : > { %773 = vst.msk [vmem:[#allocation2 + $0xf6] sm:$0xff] %vm744_vm3, %v705_v54  ;;  %v580_v55 = vpop.permute.xlu0 %579 }
 0x175   : > { %646 = vst.msk [vmem:[#allocation2 + $0x107] sm:$0xff] %vm615_vm1, %v580_v55 }
 0x177   : > { %656 = vrot.lane.b32.xlu0 %v417_v53, %s2813_s29 }
 0x17b   : > { %v578_v57 = vpop.permute.xlu2 %577 }
 0x17c   : > { %645 = vst.msk [vmem:[#allocation2 + $0xff] sm:$0xff] %vm615_vm1, %v578_v57  ;;  %v328_v58 = vpop.permute.xlu0 %327 }
 0x17d   : > { %v418_v59 = vmax.f32 %v3008_v0, %v328_v58 }
 0x17f   : > { %650 = vrot.lane.b32.xlu0 %v3060_v24, %s2813_s29  ;;  %460 = vst.msk [vmem:[#allocation2 + $0x40] sm:$0xff] %vm454_vm0, %v418_v59  ;;  %v2686_v24 = vld [vmem:[%s3885_s1 + $0x10] sm:$0xf] }
 0x180   : > { %v2687_v26 = vor.u32 %v2776_v25, %v2686_v24 }
 0x183   : > { %v703_v56 = vpop.permute.xlu1 %702  ;;  %v709_v60 = vpop.permute.xlu2 %708 }
 0x184   : > { %772 = vst.msk [vmem:[#allocation2 + $0xee] sm:$0xff] %vm744_vm3, %v703_v56  ;;  %v777_v56 = vld [vmem:[#allocation2 + $0x8] sm:$0xff] }
 0x185   : > { %775 = vst.msk [vmem:[#allocation2 + $0x106] sm:$0xff] %vm744_vm3, %v709_v60 }
 0x187   : > { %529 = vrot.lane.b32.xlu0 %v418_v59, %s2812_s28 }
 0x18b   : > { %v318_v61 = vpop.permute.xlu1 %317  ;;  %v805_v62 = vld [vmem:[#allocation2 + $0xe8] sm:$0xff]  ;;  %v806_v63 = vld [vmem:[#allocation2 + $0xf0] sm:$0xff] }
 0x18c   : > { %v413_v0 = vmax.f32 %v3029_v11, %v318_v61  ;;  %v3128_v1 = vpack.c.bf16 %v806_v63, %v805_v62  ;;  %v582_v2 = vpop.permute.xlu2 %581 }
 0x18d   : > { %647 = vst.msk [vmem:[#allocation2 + $0x10f] sm:$0xff] %vm615_vm1, %v582_v2 }
 0x18e   : > { %455 = vst.msk [vmem:[#allocation2 + $0x18] sm:$0xff] %vm454_vm0, %v413_v0  ;;  %2659 = vmatmul.msk.bf16.gmra.mxu2 %vm445_vm4, %v3128_v1  ;;  %648 = vrot.lane.b32.xlu2 %v413_v0, %s2813_s29 }
 0x18f   : > { %519 = vrot.lane.b32.xlu1 %v413_v0, %s2812_s28 }
 0x193   : > { %v707_v3 = vpop.permute.xlu1 %706 }
 0x194   : > { %774 = vst.msk [vmem:[#allocation2 + $0xfe] sm:$0xff] %vm744_vm3, %v707_v3  ;;  %v334_v6 = vpop.permute.xlu2 %333 }
 0x195   : > { %v421_v8 = vmax.f32 %v3082_v36, %v334_v6  ;;  %v3205_v51 = vpop.f32.mrf.mxu2 }
 0x196   : > { %337 = vrot.lane.b32.xlu2 %v3137_v4, %s2811_s27 }
 0x197   : > { %335 = vrot.lane.b32.xlu1 %v3141_v5, %s2811_s27  ;;  %463 = vst.msk [vmem:[#allocation2 + $0x58] sm:$0xff] %vm454_vm0, %v421_v8 }
 0x19b   : > { %v330_v9 = vpop.permute.xlu1 %329  ;;  %v807_v10 = vld [vmem:[#allocation2 + $0xf8] sm:$0xff]  ;;  %v808_v11 = vld [vmem:[#allocation2 + $0x100] sm:$0xff] }
 0x19c   : > { %v419_v12 = vmax.f32 %v3056_v23, %v330_v9  ;;  %v3150_v13 = vpack.c.bf16 %v808_v11, %v807_v10  ;;  %v526_v29 = vpop.permute.xlu2 %525 }
 0x19d   : > { %619 = vst.msk [vmem:[#allocation2 + $0x2f] sm:$0xff] %vm615_vm1, %v526_v29  ;;  %v3213_v54 = vpop.f32.mrf.mxu2 }
 0x19e   : > { %461 = vst.msk [vmem:[#allocation2 + $0x48] sm:$0xff] %vm454_vm0, %v419_v12  ;;  %2660 = vmatmul.msk.bf16.gmra.mxu2 %vm445_vm4, %v3150_v13  ;;  %660 = vrot.lane.b32.xlu0 %v419_v12, %s2813_s29 }
 0x19f   : > { %531 = vrot.lane.b32.xlu1 %v419_v12, %s2812_s28  ;;  %658 = vrot.lane.b32.xlu2 %v418_v59, %s2813_s29 }
 0x1a3   : > { %v711_v14 = vpop.permute.xlu0 %710  ;;  %v332_v15 = vpop.permute.xlu1 %331 }
 0x1a4   : > { %776 = vst.msk [vmem:[#allocation2 + $0x10e] sm:$0xff] %vm744_vm3, %v711_v14  ;;  %v420_v16 = vmax.f32 %v3069_v27, %v332_v15  ;;  %v1184_v27 = vsel %vm886_vm2, %v2687_v26, 0  ;;  %v655_v32 = vpop.permute.xlu2 %654 }
 0x1a5   : > { %1193 = vmatpush.bf16.msrb.mxu2 %v1184_v27  ;;  %v3218_v59 = vpop.f32.mrf.mxu2 }
 0x1a6   : > { %462 = vst.msk [vmem:[#allocation2 + $0x50] sm:$0xff] %vm454_vm0, %v420_v16  ;;  %533 = vrot.lane.b32.xlu0 %v420_v16, %s2812_s28 }
 0x1a7   : > { %339 = vrot.lane.b32.xlu1 %v3161_v17, %s2811_s27  ;;  %341 = vrot.lane.b32.xlu2 %v265_v19, %s2811_s27 }
 0x1ab   : > { %v827_v21 = vld [vmem:[#allocation2 + $0x108] sm:$0xff]  ;;  %v828_v22 = vld [vmem:[#allocation2 + $0x110] sm:$0xff]  ;;  %v522_v30 = vpop.permute.xlu0 %521 }
 0x1ac   : > { %v3169_v23 = vpack.c.bf16 %v828_v22, %v827_v21  ;;  %617 = vst.msk [vmem:[#allocation2 + $0x1f] sm:$0xff] %vm615_vm1, %v522_v30 }
 0x1ae   : > { %2661 = vmatmul.msk.bf16.gmra.mxu2 %vm445_vm4, %v3169_v23  ;;  %664 = vrot.lane.b32.xlu0 %v421_v8, %s2813_s29 }
 0x1af   : > { %535 = vrot.lane.b32.xlu1 %v421_v8, %s2812_s28  ;;  %662 = vrot.lane.b32.xlu2 %v420_v16, %s2813_s29 }
 0x1b3   : > { %v524_v31 = vpop.permute.xlu1 %523 }
 0x1b4   : > { %618 = vst.msk [vmem:[#allocation2 + $0x27] sm:$0xff] %vm615_vm1, %v524_v31 }
 0x1b5   : > { %748 = vst.msk [vmem:[#allocation2 + $0x2e] sm:$0xff] %vm744_vm3, %v655_v32  ;;  %v1380_v32 = vld [vmem:[%s3889_s5 + $0x28] sm:$0xff] }
 0x1b7   : > { %343 = vrot.lane.b32.xlu1 %v3184_v28, %s2811_s27 }
 0x1bb   : > { %v653_v34 = vpop.permute.xlu1 %652 }
 0x1bc   : > { %747 = vst.msk [vmem:[#allocation2 + $0x26] sm:$0xff] %vm744_vm3, %v653_v34  ;;  %v1379_v34 = vld [vmem:[%s3889_s5 + $0x20] sm:$0xff] }
 0x1c3   : > { %v1079_v43 = vld [vmem:[#allocation2 + $0x28] sm:$0xff] }
 0x1e1   : > { %v528_v36 = vpop.permute.xlu0 %527 }
 0x1e2   : > { %620 = vst.msk [vmem:[#allocation2 + $0x37] sm:$0xff] %vm615_vm1, %v528_v36  ;;  %v1376_v36 = vld [vmem:[%s3889_s5 + $0x8] sm:$0xff] }
 0x1e8   : > { %v649_v39 = vpop.permute.xlu2 %648 }
 0x1e9   : > { %v657_v41 = vpop.permute.xlu0 %656 }
 0x1ea   : > { %749 = vst.msk [vmem:[#allocation2 + $0x36] sm:$0xff] %vm744_vm3, %v657_v41  ;;  %v1381_v41 = vld [vmem:[%s3889_s5 + $0x30] sm:$0xff] }
 0x1f0   : > { %v338_v44 = vpop.permute.xlu2 %337 }
 0x1f1   : > { %v1080_v46 = vld [vmem:[#allocation2 + $0x30] sm:$0xff]  ;;  %v423_v47 = vmax.f32 %v3137_v4, %v338_v44  ;;  %v651_v48 = vpop.permute.xlu0 %650  ;;  %v3227_v4 = vpop.f32.mrf.mxu2 }
 0x1f2   : > { %v3203_v50 = vpack.c.bf16 %v1080_v46, %v1079_v43 }
 0x1f3   : > { %465 = vst.msk [vmem:[#allocation2 + $0x68] sm:$0xff] %vm454_vm0, %v423_v47  ;;  %539 = vrot.lane.b32.xlu0 %v423_v47, %s2812_s28 }
 0x1f4   : > { %2688 = vmatmul.msk.bf16.vlgmr.msrb.gmra.mxu2 %vm445_vm4, %v3203_v50 }
 0x1f9   : > { %v530_v52 = vpop.permute.xlu0 %529  ;;  %v659_v53 = vpop.permute.xlu2 %658 }
 0x1fa   : > { %621 = vst.msk [vmem:[#allocation2 + $0x3f] sm:$0xff] %vm615_vm1, %v530_v52  ;;  %v3233_v12 = vpop.f32.mrf.mxu2 }
 0x1fb   : > { %750 = vst.msk [vmem:[#allocation2 + $0x3e] sm:$0xff] %vm744_vm3, %v659_v53 }
 0x201   : > { %v520_v55 = vpop.permute.xlu1 %519  ;;  %v342_v57 = vpop.permute.xlu2 %341 }
 0x202   : > { %616 = vst.msk [vmem:[#allocation2 + $0x17] sm:$0xff] %vm615_vm1, %v520_v55  ;;  %v425_v58 = vmax.f32 %v265_v19, %v342_v57  ;;  %v1081_v11 = vld [vmem:[#allocation2 + $0x38] sm:$0xff] }
 0x203   : > { %745 = vst.msk [vmem:[#allocation2 + $0x16] sm:$0xff] %vm744_vm3, %v649_v39 }
 0x204   : > { %746 = vst.msk [vmem:[#allocation2 + $0x1e] sm:$0xff] %vm744_vm3, %v651_v48  ;;  %v1383_v48 = vld [vmem:[%s3889_s5 + $0x40] sm:$0xff] }
 0x205   : > { %467 = vst.msk [vmem:[#allocation2 + $0x78] sm:$0xff] %vm454_vm0, %v425_v58 }
 0x209   : > { %v336_v60 = vpop.permute.xlu1 %335  ;;  %v663_v9 = vpop.permute.xlu2 %662 }
 0x20a   : > { %v422_v61 = vmax.f32 %v3141_v5, %v336_v60  ;;  %v778_v62 = vld [vmem:[#allocation2 + $0x10] sm:$0xff]  ;;  %v2815_v5 = vmov 0  }
 0x20b   : > { %v779_v63 = vld [vmem:[#allocation2 + $0x18] sm:$0xff]  ;;  %v780_v0 = vld [vmem:[#allocation2 + $0x20] sm:$0xff]  ;;  %v809_v2 = vpack.c.bf16 %v778_v62, %v777_v56  ;;  %2796 = vset.pattern.permute.xlu0 %v2815_v5  ;;  %2797 = vset.pattern.permute.xlu1 %v2815_v5 }
 0x20c   : > { %464 = vst.msk [vmem:[#allocation2 + $0x60] sm:$0xff] %vm454_vm0, %v422_v61  ;;  %666 = vrot.lane.b32.xlu1 %v422_v61, %s2813_s29  ;;  %537 = vrot.lane.b32.xlu2 %v422_v61, %s2812_s28  ;;  %v810_v3 = vpack.c.bf16 %v780_v0, %v779_v63 }
 0x20d   : > { %2666 = vmatmul.msk.bf16.vlgmr.msra.gmra.mxu1 %vm445_vm4, %v809_v2  ;;  %2798 = vset.pattern.permute.xlu2 %v2815_v5 }
 0x20e   : > { %2646 = vmatmul.msk.bf16.vlgmr.msra.gmra.mxu0 %vm445_vm4, %v810_v3 }
 0x210   : > { %v661_v6 = vpop.permute.xlu0 %660 }
 0x211   : > { %v532_v8 = vpop.permute.xlu1 %531 }
 0x212   : > { %622 = vst.msk [vmem:[#allocation2 + $0x47] sm:$0xff] %vm615_vm1, %v532_v8 }
 0x213   : > { %751 = vst.msk [vmem:[#allocation2 + $0x46] sm:$0xff] %vm744_vm3, %v661_v6 }
 0x214   : > { %668 = vrot.lane.b32.xlu2 %v423_v47, %s2813_s29  ;;  %543 = vrot.lane.b32.xlu1 %v425_v58, %s2812_s28  ;;  %v1382_v47 = vld [vmem:[%s3889_s5 + $0x38] sm:$0xff] }
 0x218   : > { %v534_v10 = vpop.permute.xlu0 %533 }
 0x219   : > { %v340_v14 = vpop.permute.xlu1 %339  ;;  %623 = vst.msk [vmem:[#allocation2 + $0x4f] sm:$0xff] %vm615_vm1, %v534_v10 }
 0x21a   : > { %v424_v15 = vmax.f32 %v3161_v17, %v340_v14  ;;  %v1082_v16 = vld [vmem:[#allocation2 + $0x40] sm:$0xff]  ;;  %752 = vst.msk [vmem:[#allocation2 + $0x4e] sm:$0xff] %vm744_vm3, %v663_v9  ;;  %v3246_v17 = vpop.f32.mrf.mxu2 }
 0x21b   : > { %v1112_v19 = vpack.c.bf16 %v1082_v16, %v1081_v11 }
 0x21c   : > { %466 = vst.msk [vmem:[#allocation2 + $0x70] sm:$0xff] %vm454_vm0, %v424_v15  ;;  %670 = vrot.lane.b32.xlu2 %v424_v15, %s2813_s29  ;;  %541 = vrot.lane.b32.xlu0 %v424_v15, %s2812_s28 }
 0x21d   : > { %2667 = vmatmul.msk.bf16.gmra.mxu1 %vm445_vm4, %v810_v3  ;;  %2689 = vmatmul.msk.bf16.gmra.mxu2 %vm445_vm4, %v1112_v19 }
 0x21e   : > { %2647 = vmatmul.msk.bf16.gmra.mxu0 %vm445_vm4, %v3203_v50 }
 0x220   : > { %v665_v21 = vpop.permute.xlu0 %664 }
 0x221   : > { %v536_v22 = vpop.permute.xlu1 %535  ;;  %v1083_v24 = vld [vmem:[#allocation2 + $0x48] sm:$0xff] }
 0x222   : > { %624 = vst.msk [vmem:[#allocation2 + $0x57] sm:$0xff] %vm615_vm1, %v536_v22  ;;  %v3257_v30 = vpop.f32.mrf.mxu2 }
 0x223   : > { %753 = vst.msk [vmem:[#allocation2 + $0x56] sm:$0xff] %vm744_vm3, %v665_v21 }
 0x224   : > { %547 = vrot.lane.b32.xlu2 %v2930_v33, %s2812_s28  ;;  %672 = vrot.lane.b32.xlu0 %v425_v58, %s2813_s29 }
 0x229   : > { %v344_v25 = vpop.permute.xlu1 %343 }
 0x22a   : > { %v426_v26 = vmax.f32 %v3184_v28, %v344_v25  ;;  %v1084_v27 = vld [vmem:[#allocation2 + $0x50] sm:$0xff]  ;;  %v1375_v28 = vld [vmem:[%s3889_s5] sm:$0xff]  ;;  %v3272_v31 = vpop.f32.mrf.mxu2 }
 0x22b   : > { %v1113_v29 = vpack.c.bf16 %v1084_v27, %v1083_v24 }
 0x22c   : > { %468 = vst.msk [vmem:[#allocation2 + $0x80] sm:$0xff] %vm454_vm0, %v426_v26  ;;  %678 = vrot.lane.b32.xlu2 %v2901_v20, %s2813_s29  ;;  %674 = vrot.lane.b32.xlu0 %v426_v26, %s2813_s29  ;;  %v1377_v20 = vld [vmem:[%s3889_s5 + $0x10] sm:$0xff] }
 0x22d   : > { %545 = vrot.lane.b32.xlu1 %v426_v26, %s2812_s28  ;;  %2668 = vmatmul.msk.bf16.gmra.mxu1 %vm445_vm4, %v3203_v50 }
 0x22e   : > { %2648 = vmatmul.msk.bf16.gmra.mxu0 %vm445_vm4, %v1112_v19  ;;  %2690 = vmatmul.msk.bf16.gmra.mxu2 %vm445_vm4, %v1113_v29 }
 0x234   : > { %1409 = vperm.xlu0 %2796, %v1375_v28   ;;  %1419 = vperm.xlu2 %2798, %v1377_v20  }
 0x235   : > { %676 = vrot.lane.b32.xlu1 %v2930_v33, %s2813_s29  ;;  %v3285_v33 = vpop.f32.mrf.mxu2 }
 0x23c   : > { %1434 = vperm.xlu0 %2796, %v1380_v32   ;;  %1429 = vperm.xlu2 %2798, %v1379_v34  }
 0x23d   : > { %1414 = vperm.xlu1 %2797, %v1376_v36   ;;  %2669 = vmatmul.msk.bf16.gmra.mxu1 %vm445_vm4, %v1112_v19  ;;  %v3290_v38 = vpop.f32.mrf.mxu2  ;;  %v3330_v19 = vld [vmem:[%s3886_s2] ss:$0 sm:$0xff] }
 0x23e   : > { %2649 = vmatmul.msk.bf16.gmra.mxu0 %vm445_vm4, %v1113_v29 }
 0x244   : > { %1444 = vperm.xlu2 %2798, %v1382_v47   ;;  %1449 = vperm.xlu0 %2796, %v1383_v48  }
 0x245   : > { %1424 = vperm.xlu1 %2797, %v1378_v37   ;;  %v3293_v39 = vpop.f32.mrf.mxu2 }
 0x24d   : > { %2670 = vmatmul.msk.bf16.gmra.mxu1 %vm445_vm4, %v1113_v29  ;;  %v3295_v40 = vpop.f32.mrf.mxu2  ;;  %1439 = vperm.xlu1 %2797, %v1381_v41  }
 0x255   : > { %v3301_v44 = vpop.f32.mrf.mxu2 }
 0x25d   : > { %v3311_v50 = vpop.f32.mrf.mxu2 }
 0x265   : > { %v540_v42 = vpop.permute.xlu0 %539  ;;  %v3313_v53 = vpop.f32.mrf.mxu2 }
 0x266   : > { %v538_v43 = vpop.permute.xlu2 %537  ;;  %626 = vst.msk [vmem:[#allocation2 + $0x67] sm:$0xff] %vm615_vm1, %v540_v42 }
 0x267   : > { %625 = vst.msk [vmem:[#allocation2 + $0x5f] sm:$0xff] %vm615_vm1, %v538_v43 }
 0x26d   : > { %v3317_v58 = vpop.f32.mrf.mxu2 }
 0x26e   : > { %v669_v46 = vpop.permute.xlu2 %668 }
 0x26f   : > { %755 = vst.msk [vmem:[#allocation2 + $0x66] sm:$0xff] %vm744_vm3, %v669_v46 }
 0x276   : > { %v671_v52 = vpop.permute.xlu2 %670 }
 0x277   : > { %v1195_v3 = vpop.f32.mrf.mxu2 }
 0x27e   : > { %v548_v55 = vpop.permute.xlu2 %547  ;;  %v667_v57 = vpop.permute.xlu1 %666 }
 0x27f   : > { %630 = vst.msk [vmem:[#allocation2 + $0x87] sm:$0xff] %vm615_vm1, %v548_v55  ;;  %v1197_v10 = vpop.f32.mrf.mxu2 }
 0x280   : > { %754 = vst.msk [vmem:[#allocation2 + $0x5e] sm:$0xff] %vm744_vm3, %v667_v57 }
 0x286   : > { %v679_v56 = vpop.permute.xlu2 %678  ;;  %v544_v60 = vpop.permute.xlu1 %543 }
 0x287   : > { %760 = vst.msk [vmem:[#allocation2 + $0x8e] sm:$0xff] %vm744_vm3, %v679_v56  ;;  %v787_v61 = vld [vmem:[#allocation2 + $0x58] sm:$0xff]  ;;  %v788_v62 = vld [vmem:[#allocation2 + $0x60] sm:$0xff] }
 0x288   : > { %v814_v63 = vpack.c.bf16 %v788_v62, %v787_v61  ;;  %628 = vst.msk [vmem:[#allocation2 + $0x77] sm:$0xff] %vm615_vm1, %v544_v60 }
 0x28a   : > { %2650 = vmatmul.msk.bf16.gmra.mxu0 %vm445_vm4, %v814_v63  ;;  %2671 = vmatmul.msk.bf16.gmra.mxu1 %vm445_vm4, %v814_v63  ;;  %v999_v0 = vpop.f32.mrf.mxu1 }
 0x28b   : > { %2691 = vmatmul.msk.bf16.gmra.mxu2 %vm445_vm4, %v814_v63  ;;  %v899_v2 = vpop.f32.mrf.mxu0 }
 0x28c   : > { %v1000_v11 = vadd.f32 %v999_v0, %v899_v2 }
 0x28e   : > { %v542_v6 = vpop.permute.xlu0 %541  ;;  %v1275_v16 = vadd.f32 %v1195_v3, %v1000_v11  ;;  %v1420_v41 = vpop.permute.xlu2 %1419 }
 0x28f   : > { %627 = vst.msk [vmem:[#allocation2 + $0x6f] sm:$0xff] %vm615_vm1, %v542_v6 }
 0x290   : > { %756 = vst.msk [vmem:[#allocation2 + $0x6e] sm:$0xff] %vm744_vm3, %v671_v52  ;;  %v1311_v20 = vadd.f32 %v3330_v19, %v1275_v16 }
 0x292   : > { %v1001_v8 = vpop.f32.mrf.mxu1  ;;  %v1343_v43 = vmax.f32 %v1311_v20, 0.0 }
 0x293   : > { %v901_v5 = vpop.f32.mrf.mxu0 }
 0x294   : > { %v1002_v32 = vadd.f32 %v1001_v8, %v901_v5  ;;  %v794_v5 = vld [vmem:[#allocation2 + $0x90] sm:$0xff] }
 0x296   : > { %v673_v9 = vpop.permute.xlu0 %672  ;;  %v1276_v46 = vadd.f32 %v1197_v10, %v1002_v32 }
 0x297   : > { %757 = vst.msk [vmem:[#allocation2 + $0x76] sm:$0xff] %vm744_vm3, %v673_v9  ;;  %v789_v22 = vld [vmem:[#allocation2 + $0x68] sm:$0xff] }
 0x298   : > { %v1312_v56 = vadd.f32 %v3330_v19, %v1276_v46  ;;  %v1385_v46 = vld [vmem:[%s3889_s5 + $0x50] sm:$0xff] }
 0x29a   : > { %v1004_v14 = vpop.f32.mrf.mxu1  ;;  %v1344_v2 = vmax.f32 %v1312_v56, 0.0 }
 0x29b   : > { %v904_v15 = vpop.f32.mrf.mxu0 }
 0x29c   : > { %v1005_v25 = vadd.f32 %v1004_v14, %v904_v15 }
 0x29e   : > { %v675_v21 = vpop.permute.xlu0 %674  ;;  %v790_v24 = vld [vmem:[#allocation2 + $0x70] sm:$0xff] }
 0x29f   : > { %v546_v26 = vpop.permute.xlu1 %545  ;;  %v815_v27 = vpack.c.bf16 %v790_v24, %v789_v22  ;;  %v1430_v24 = vpop.permute.xlu2 %1429 }
 0x2a0   : > { %629 = vst.msk [vmem:[#allocation2 + $0x7f] sm:$0xff] %vm615_vm1, %v546_v26  ;;  %v1200_v29 = vpop.f32.mrf.mxu2 }
 0x2a1   : > { %758 = vst.msk [vmem:[#allocation2 + $0x7e] sm:$0xff] %vm744_vm3, %v675_v21  ;;  %v1277_v28 = vadd.f32 %v1200_v29, %v1005_v25  ;;  %2651 = vmatmul.msk.bf16.gmra.mxu0 %vm445_vm4, %v815_v27  ;;  %2672 = vmatmul.msk.bf16.gmra.mxu1 %vm445_vm4, %v815_v27 }
 0x2a2   : > { %2692 = vmatmul.msk.bf16.gmra.mxu2 %vm445_vm4, %v815_v27  ;;  %v1006_v34 = vpop.f32.mrf.mxu1 }
 0x2a3   : > { %v1313_v36 = vadd.f32 %v3330_v19, %v1277_v28  ;;  %v906_v37 = vpop.f32.mrf.mxu0 }
 0x2a4   : > { %v1007_v62 = vadd.f32 %v1006_v34, %v906_v37 }
 0x2a5   : > { %v1345_v42 = vmax.f32 %v1313_v36, 0.0 }
 0x2a6   : > { %v1410_v47 = vpop.permute.xlu0 %1409 }
 0x2a7   : > { %v1569_v48 = vmul.f32 %v1420_v41, %v1345_v42  ;;  %v1567_v52 = vmul.f32 %v1410_v47, %v1343_v43  ;;  %v677_v55 = vpop.permute.xlu1 %676 }
 0x2a8   : > { %759 = vst.msk [vmem:[#allocation2 + $0x86] sm:$0xff] %vm744_vm3, %v677_v55  ;;  %v1202_v57 = vpop.f32.mrf.mxu2  ;;  %v791_v63 = vld [vmem:[#allocation2 + $0x78] sm:$0xff] }
 0x2a9   : > { %1611 = vst.msk [vmem:[#allocation3 + $0x29] sm:$0xff] %vm1608_vm6, %v1569_v48  ;;  %1677 = vrot.lane.b32.xlu0 %v1569_v48, %s2813_s29  ;;  %1673 = vrot.lane.b32.xlu1 %v1567_v52, %s2813_s29  ;;  %v1278_v0 = vadd.f32 %v1202_v57, %v1007_v62  ;;  %v1445_v57 = vpop.permute.xlu2 %1444 }
 0x2aa   : > { %1609 = vst.msk [vmem:[#allocation3 + $0x19] sm:$0xff] %vm1608_vm6, %v1567_v52  ;;  %v1009_v61 = vpop.f32.mrf.mxu1 }
 0x2ab   : > { %v909_v60 = vpop.f32.mrf.mxu0  ;;  %v1314_v21 = vadd.f32 %v3330_v19, %v1278_v0 }
 0x2ac   : > { %v1010_v9 = vadd.f32 %v1009_v61, %v909_v60 }
 0x2ad   : > { %v1346_v29 = vmax.f32 %v1314_v21, 0.0  ;;  %v2749_v21 = vld [vmem:[%s3887_s3 + $0x20] sm:$0xf] }
 0x2ae   : > { %v1435_v42 = vpop.permute.xlu0 %1434 }
 0x2af   : > { %v1415_v3 = vpop.permute.xlu1 %1414  ;;  %v792_v6 = vld [vmem:[#allocation2 + $0x80] sm:$0xff]  ;;  %v793_v8 = vld [vmem:[#allocation2 + $0x88] sm:$0xff] }
 0x2b0   : > { %v1568_v10 = vmul.f32 %v1415_v3, %v1344_v2  ;;  %v816_v11 = vpack.c.bf16 %v792_v6, %v791_v63  ;;  %v817_v14 = vpack.c.bf16 %v794_v5, %v793_v8  ;;  %v2778_v5 = vld [vmem:[%s3887_s3 + $0xc] sm:$0xff] }
 0x2b1   : > { %v1205_v15 = vpop.f32.mrf.mxu2  ;;  %1806 = vrot.lane.b32.xlu0 %v1569_v48, %s2816_s18  ;;  %1802 = vrot.lane.b32.xlu1 %v1567_v52, %s2816_s18  ;;  %v1384_v48 = vld [vmem:[%s3889_s5 + $0x48] sm:$0xff]  ;;  %v1387_v52 = vld [vmem:[%s3889_s5 + $0x60] sm:$0xff] }
 0x2b2   : > { %1610 = vst.msk [vmem:[#allocation3 + $0x21] sm:$0xff] %vm1608_vm6, %v1568_v10  ;;  %v1279_v16 = vadd.f32 %v1205_v15, %v1010_v9  ;;  %2652 = vmatmul.msk.bf16.gmra.mxu0 %vm445_vm4, %v816_v11  ;;  %2673 = vmatmul.msk.bf16.gmra.mxu1 %vm445_vm4, %v816_v11  ;;  %v1011_v26 = vpop.f32.mrf.mxu1 }
 0x2b3   : > { %2674 = vmatmul.msk.bf16.vlgmr.msra.gmra.mxu3 %vm445_vm4, %v817_v14  ;;  %2693 = vmatmul.msk.bf16.gmra.mxu2 %vm445_vm4, %v816_v11  ;;  %v911_v25 = vpop.f32.mrf.mxu0 }
 0x2b4   : > { %v1315_v22 = vadd.f32 %v3330_v19, %v1279_v16  ;;  %1675 = vrot.lane.b32.xlu2 %v1568_v10, %s2813_s29  ;;  %v1012_v20 = vadd.f32 %v1011_v26, %v911_v25  ;;  %v2300_v25 = vunpack.c.l.b16 %v2749_v21 }
 0x2b6   : > { %v1347_v27 = vmax.f32 %v1315_v22, 0.0  ;;  %v1450_v15 = vpop.permute.xlu0 %1449 }
 0x2b7   : > { %v1425_v28 = vpop.permute.xlu1 %1424 }
 0x2b8   : > { %v1571_v32 = vmul.f32 %v1430_v24, %v1347_v27  ;;  %v1570_v34 = vmul.f32 %v1425_v28, %v1346_v29  ;;  %v2302_v28 = vpack.c.b16 %v2300_v25, %v2300_v25  ;;  %v1388_v25 = vld [vmem:[%s3889_s5 + $0x68] sm:$0xff] }
 0x2b9   : > { %v1207_v36 = vpop.f32.mrf.mxu2 }
 0x2ba   : > { %1613 = vst.msk [vmem:[#allocation3 + $0x39] sm:$0xff] %vm1608_vm6, %v1571_v32  ;;  %v1280_v37 = vadd.f32 %v1207_v36, %v1012_v20  ;;  %1808 = vrot.lane.b32.xlu0 %v1570_v34, %s2816_s18  ;;  %1679 = vrot.lane.b32.xlu1 %v1570_v34, %s2813_s29  ;;  %v1014_v61 = vpop.f32.mrf.mxu1 }
 0x2bb   : > { %1612 = vst.msk [vmem:[#allocation3 + $0x31] sm:$0xff] %vm1608_vm6, %v1570_v34  ;;  %v914_v60 = vpop.f32.mrf.mxu0 }
 0x2bc   : > { %1804 = vrot.lane.b32.xlu2 %v1568_v10, %s2816_s18  ;;  %v1316_v41 = vadd.f32 %v3330_v19, %v1280_v37  ;;  %v1015_v2 = vadd.f32 %v1014_v61, %v914_v60  ;;  %v2779_v37 = vld [vmem:[%s3887_s3 + $0x18] sm:$0xff] }
 0x2be   : > { %v1348_v43 = vmax.f32 %v1316_v41, 0.0 }
 0x2c0   : > { %v1572_v47 = vmul.f32 %v1435_v42, %v1348_v43  ;;  %v1386_v43 = vld [vmem:[%s3889_s5 + $0x58] sm:$0xff] }
 0x2c2   : > { %1614 = vst.msk [vmem:[#allocation3 + $0x41] sm:$0xff] %vm1608_vm6, %v1572_v47  ;;  %2653 = vmatmul.msk.bf16.gmra.mxu0 %vm445_vm4, %v817_v14  ;;  %1459 = vperm.xlu0 %2796, %v1385_v46   ;;  %v1016_v11 = vpop.f32.mrf.mxu1 }
 0x2c3   : > { %2675 = vmatmul.msk.bf16.gmra.mxu3 %vm445_vm4, %v3017_v7  ;;  %2694 = vmatmul.msk.bf16.gmra.mxu2 %vm445_vm4, %v817_v14  ;;  %v916_v10 = vpop.f32.mrf.mxu0  ;;  %v1440_v14 = vpop.permute.xlu1 %1439 }
 0x2c4   : > { %1681 = vrot.lane.b32.xlu2 %v1571_v32, %s2813_s29  ;;  %1810 = vrot.lane.b32.xlu1 %v1571_v32, %s2816_s18  ;;  %v1017_v22 = vadd.f32 %v1016_v11, %v916_v10 }
 0x2ca   : > { %1812 = vrot.lane.b32.xlu0 %v1572_v47, %s2816_s18 }
 0x2cc   : > { %1454 = vperm.xlu2 %2798, %v1384_v48   ;;  %1683 = vrot.lane.b32.xlu1 %v1572_v47, %s2813_s29  ;;  %v1019_v47 = vpop.f32.mrf.mxu1 }
 0x2d2   : > { %1469 = vperm.xlu0 %2796, %v1387_v52  }
 0x2d3   : > { %2676 = vmatmul.msk.bf16.gmra.mxu3 %vm445_vm4, %v3045_v18  ;;  %2695 = vmatmul.msk.bf16.gmra.mxu2 %vm445_vm4, %v3017_v7  ;;  %v1981_v7 = vld [vmem:[%s3887_s3 + $0x8] sm:$0xf] }
 0x2d4   : > { %v2144_v55 = vunpack.c.l.b16 %v1981_v7 }
 0x2d6   : > { %v2146_v56 = vpack.c.b16 %v2144_v55, %v2144_v55  ;;  %v1389_v55 = vld [vmem:[%s3889_s5 + $0x70] sm:$0xff] }
 0x2d8   : > { %v2152_v62 = vsel %vm2046_vm7, %v2146_v56, 0 }
 0x2d9   : > { %2160 = vmatpush.bf16.msrb.mxu0 %v2152_v62 }
 0x2e3   : > { %2677 = vmatmul.msk.bf16.gmra.mxu3 %vm445_vm4, %v3079_v35  ;;  %2696 = vmatmul.msk.bf16.gmra.mxu2 %vm445_vm4, %v3045_v18  ;;  %v2706_v18 = vld [vmem:[%s3887_s3 + $0x14] sm:$0xf] }
 0x2f3   : > { %2678 = vmatmul.msk.bf16.gmra.mxu3 %vm445_vm4, %v3098_v45  ;;  %2697 = vmatmul.msk.bf16.gmra.mxu2 %vm445_vm4, %v3079_v35  ;;  %v1994_v35 = vunpack.c.l.b16 %v2706_v18 }
 0x2f5   : > { %v1996_v63 = vpack.c.b16 %v1994_v35, %v1994_v35  ;;  %v1931_v35 = vld [vmem:[#allocation3 + $0x8] sm:$0xff] }
 0x2f7   : > { %v2048_v0 = vsel %vm2046_vm7, %v1996_v63, 0 }
 0x2f8   : > { %2056 = vmatpush.bf16.msrb.mxu3 %v2048_v0 }
 0x2fc   : > { %2057 = vmatpush.bf16.msrb.mxu3 %v2778_v5 }
 0x303   : > { %2679 = vmatmul.msk.bf16.gmra.mxu3 %vm445_vm4, %v3107_v49  ;;  %2698 = vmatmul.msk.bf16.gmra.mxu2 %vm445_vm4, %v3098_v45  ;;  %v2777_v45 = vld [vmem:[%s3887_s3] sm:$0xff] }
 0x304   : > { %2161 = vmatpush.bf16.msrb.mxu0 %v2777_v45 }
 0x307   : > { %v919_v41 = vpop.f32.mrf.mxu0 }
 0x308   : > { %v1020_v7 = vadd.f32 %v1019_v47, %v919_v41 }
 0x30e   : > { %v1676_v3 = vpop.permute.xlu2 %1675  ;;  %v1210_v6 = vpop.f32.mrf.mxu2 }
 0x30f   : > { %1771 = vst.msk [vmem:[#allocation3 + $0x20] sm:$0xff] %vm1769_vm8, %v1676_v3  ;;  %v1281_v8 = vadd.f32 %v1210_v6, %v1015_v2  ;;  %v921_v18 = vpop.f32.mrf.mxu0 }
 0x311   : > { %v1317_v9 = vadd.f32 %v3330_v19, %v1281_v8 }
 0x313   : > { %v1349_v16 = vmax.f32 %v1317_v9, 0.0  ;;  %2680 = vmatmul.msk.bf16.gmra.mxu3 %vm445_vm4, %v3128_v1  ;;  %2699 = vmatmul.msk.bf16.gmra.mxu2 %vm445_vm4, %v3107_v49  ;;  %v2353_v49 = vsel %vm2046_vm7, %v2302_v28, 0 }
 0x314   : > { %2361 = vmatpush.bf16.msrb.mxu1 %v2353_v49 }
 0x315   : > { %v1573_v24 = vmul.f32 %v1440_v14, %v1349_v16 }
 0x316   : > { %v1805_v26 = vpop.permute.xlu2 %1804  ;;  %v1212_v27 = vpop.f32.mrf.mxu2 }
 0x317   : > { %v1282_v29 = vadd.f32 %v1212_v27, %v1017_v22  ;;  %1814 = vrot.lane.b32.xlu1 %v1573_v24, %s2816_s18  ;;  %1615 = vst.msk [vmem:[#allocation3 + $0x49] sm:$0xff] %vm1608_vm6, %v1573_v24  ;;  %1685 = vrot.lane.b32.xlu2 %v1573_v24, %s2813_s29 }
 0x318   : > { %2362 = vmatpush.bf16.msrb.mxu1 %v2779_v37 }
 0x319   : > { %v1318_v20 = vadd.f32 %v3330_v19, %v1282_v29 }
 0x31b   : > { %v1350_v32 = vmax.f32 %v1318_v20, 0.0  ;;  %v1678_v34 = vpop.permute.xlu0 %1677  ;;  %v1674_v36 = vpop.permute.xlu1 %1673 }
 0x31c   : > { %1772 = vst.msk [vmem:[#allocation3 + $0x28] sm:$0xff] %vm1769_vm8, %v1678_v34 }
 0x31d   : > { %1770 = vst.msk [vmem:[#allocation3 + $0x18] sm:$0xff] %vm1769_vm8, %v1674_v36  ;;  %v1574_v42 = vmul.f32 %v1445_v57, %v1350_v32  ;;  %v1391_v32 = vld [vmem:[%s3889_s5 + $0x80] sm:$0xff] }
 0x31e   : > { %v1682_v46 = vpop.permute.xlu2 %1681  ;;  %1900 = vst.msk [vmem:[#allocation3 + $0x1f] sm:$0xff] %vm1898_vm9, %v1805_v26  ;;  %v924_v10 = vpop.f32.mrf.mxu0 }
 0x31f   : > { %1774 = vst.msk [vmem:[#allocation3 + $0x38] sm:$0xff] %vm1769_vm8, %v1682_v46  ;;  %1816 = vrot.lane.b32.xlu0 %v1574_v42, %s2816_s18  ;;  %1687 = vrot.lane.b32.xlu1 %v1574_v42, %s2813_s29 }
 0x320   : > { %1616 = vst.msk [vmem:[#allocation3 + $0x51] sm:$0xff] %vm1608_vm6, %v1574_v42  ;;  %1464 = vperm.xlu2 %2798, %v1386_v43  }
 0x323   : > { %2681 = vmatmul.msk.bf16.gmra.mxu3 %vm445_vm4, %v3150_v13  ;;  %2700 = vmatmul.msk.bf16.gmra.mxu2 %vm445_vm4, %v3128_v1  ;;  %v1807_v48 = vpop.permute.xlu0 %1806  ;;  %v1803_v52 = vpop.permute.xlu1 %1802 }
 0x324   : > { %1901 = vst.msk [vmem:[#allocation3 + $0x27] sm:$0xff] %vm1898_vm9, %v1807_v48  ;;  %v1021_v1 = vpop.f32.mrf.mxu1 }
 0x325   : > { %1899 = vst.msk [vmem:[#allocation3 + $0x17] sm:$0xff] %vm1898_vm9, %v1803_v52  ;;  %v1215_v57 = vpop.f32.mrf.mxu2  ;;  %v1022_v62 = vadd.f32 %v1021_v1, %v921_v18 }
 0x326   : > { %v1283_v56 = vadd.f32 %v1215_v57, %v1020_v7  ;;  %v1455_v21 = vpop.permute.xlu2 %1454  ;;  %v926_v20 = vpop.f32.mrf.mxu0  ;;  %v1390_v57 = vld [vmem:[%s3889_s5 + $0x78] sm:$0xff] }
 0x327   : > { %1479 = vperm.xlu0 %2796, %v1389_v55  }
 0x328   : > { %v1319_v60 = vadd.f32 %v3330_v19, %v1283_v56 }
 0x32a   : > { %v1351_v61 = vmax.f32 %v1319_v60, 0.0 }
 0x32b   : > { %v1934_v9 = vld [vmem:[#allocation3 + $0x20] sm:$0xff] }
 0x32c   : > { %v1809_v63 = vpop.permute.xlu0 %1808  ;;  %v1680_v45 = vpop.permute.xlu1 %1679  ;;  %v1575_v0 = vmul.f32 %v1450_v15, %v1351_v61  ;;  %v1932_v2 = vld [vmem:[#allocation3 + $0x10] sm:$0xff]  ;;  %v1933_v5 = vld [vmem:[#allocation3 + $0x18] sm:$0xff] }
 0x32d   : > { %1773 = vst.msk [vmem:[#allocation3 + $0x30] sm:$0xff] %vm1769_vm8, %v1680_v45  ;;  %v1217_v3 = vpop.f32.mrf.mxu2  ;;  %v1963_v6 = vpack.c.bf16 %v1932_v2, %v1931_v35  ;;  %v1964_v14 = vpack.c.bf16 %v1934_v9, %v1933_v5  ;;  %v1024_v16 = vpop.f32.mrf.mxu1 }
 0x32e   : > { %1902 = vst.msk [vmem:[#allocation3 + $0x2f] sm:$0xff] %vm1898_vm9, %v1809_v63  ;;  %v1284_v8 = vadd.f32 %v1217_v3, %v1022_v62  ;;  %1818 = vrot.lane.b32.xlu1 %v1575_v0, %s2816_s18  ;;  %1689 = vrot.lane.b32.xlu2 %v1575_v0, %s2813_s29  ;;  %v1025_v26 = vadd.f32 %v1024_v16, %v924_v10  ;;  %v1109_v62 = vld [vmem:[#allocation2 + $0x118] sm:$0xff]  ;;  %v1110_v63 = vld [vmem:[#allocation2 + $0x120] sm:$0xff]  ;;  %v1392_v3 = vld [vmem:[%s3889_s5 + $0x88] sm:$0xff] }
 0x32f   : > { %1617 = vst.msk [vmem:[#allocation3 + $0x59] sm:$0xff] %vm1608_vm6, %v1575_v0  ;;  %2731 = vmatmul.msk.bf16.vlgmr.msrb.gmra.mxu0 %vm1599_vm5, %v1963_v6  ;;  %v929_v7 = vpop.f32.mrf.mxu0  ;;  %v1126_v2 = vpack.c.bf16 %v1110_v63, %v1109_v62 }
 0x330   : > { %v1320_v11 = vadd.f32 %v3330_v19, %v1284_v8 }
 0x332   : > { %v1352_v15 = vmax.f32 %v1320_v11, 0.0 }
 0x333   : > { %2701 = vmatmul.msk.bf16.gmra.mxu2 %vm445_vm4, %v3150_v13  ;;  %2711 = vmatmul.msk.bf16.vlgmr.msrb.gmra.mxu3 %vm1599_vm5, %v1964_v14 }
 0x334   : > { %v1460_v22 = vpop.permute.xlu0 %1459  ;;  %v1576_v24 = vmul.f32 %v1455_v21, %v1352_v15 }
 0x335   : > { %v1026_v36 = vpop.f32.mrf.mxu1  ;;  %v2243_v46 = vld [vmem:[#allocation3 + $0x28] sm:$0xff] }
 0x336   : > { %v1811_v27 = vpop.permute.xlu1 %1810  ;;  %v3459_v29 = vpop.f32.mrf.mxu3  ;;  %1820 = vrot.lane.b32.xlu0 %v1576_v24, %s2816_s18  ;;  %1618 = vst.msk [vmem:[#allocation3 + $0x61] sm:$0xff] %vm1608_vm6, %v1576_v24  ;;  %1691 = vrot.lane.b32.xlu1 %v1576_v24, %s2813_s29  ;;  %v1027_v10 = vadd.f32 %v1026_v36, %v926_v20 }
 0x337   : > { %1903 = vst.msk [vmem:[#allocation3 + $0x37] sm:$0xff] %vm1898_vm9, %v1811_v27  ;;  %v1220_v13 = vpop.f32.mrf.mxu2  ;;  %1474 = vperm.xlu2 %2798, %v1388_v25   ;;  %v931_v27 = vpop.f32.mrf.mxu0 }
 0x338   : > { %v1285_v28 = vadd.f32 %v1220_v13, %v1025_v26 }
 0x33a   : > { %v1321_v49 = vadd.f32 %v3330_v19, %v1285_v28  ;;  %v1393_v28 = vld [vmem:[%s3889_s5 + $0x90] sm:$0xff] }
 0x33c   : > { %v1353_v34 = vmax.f32 %v1321_v49, 0.0  ;;  %v1813_v37 = vpop.permute.xlu0 %1812 }
 0x33d   : > { %v1029_v55 = vpop.f32.mrf.mxu1 }
 0x33e   : > { %v1684_v41 = vpop.permute.xlu1 %1683  ;;  %v3469_v42 = vpop.f32.mrf.mxu3  ;;  %1489 = vperm.xlu0 %2796, %v1391_v32   ;;  %v1577_v43 = vmul.f32 %v1460_v22, %v1353_v34  ;;  %v2244_v47 = vld [vmem:[#allocation3 + $0x30] sm:$0xff]  ;;  %v1030_v56 = vadd.f32 %v1029_v55, %v929_v7 }
 0x33f   : > { %1775 = vst.msk [vmem:[#allocation3 + $0x40] sm:$0xff] %vm1769_vm8, %v1684_v41  ;;  %v1222_v48 = vpop.f32.mrf.mxu2  ;;  %2732 = vmatmul.msk.bf16.gmra.mxu0 %vm1599_vm5, %v1964_v14  ;;  %v2275_v52 = vpack.c.bf16 %v2244_v47, %v2243_v46  ;;  %v934_v41 = vpop.f32.mrf.mxu0 }
 0x340   : > { %1904 = vst.msk [vmem:[#allocation3 + $0x3f] sm:$0xff] %vm1898_vm9, %v1813_v37  ;;  %1822 = vrot.lane.b32.xlu1 %v1577_v43, %s2816_s18  ;;  %1693 = vrot.lane.b32.xlu2 %v1577_v43, %s2813_s29  ;;  %v1286_v11 = vadd.f32 %v1222_v48, %v1027_v10 }
 0x341   : > { %1619 = vst.msk [vmem:[#allocation3 + $0x69] sm:$0xff] %vm1608_vm6, %v1577_v43  ;;  %2754 = vmatmul.msk.bf16.vlgmr.msrb.gmra.mxu1 %vm1599_vm5, %v2275_v52 }
 0x342   : > { %v1322_v15 = vadd.f32 %v3330_v19, %v1286_v11 }
 0x343   : > { %2702 = vmatmul.msk.bf16.gmra.mxu2 %vm445_vm4, %v3169_v23  ;;  %2712 = vmatmul.msk.bf16.gmra.mxu3 %vm1599_vm5, %v2275_v52 }
 0x344   : > { %v1470_v45 = vpop.permute.xlu0 %1469  ;;  %v1354_v21 = vmax.f32 %v1322_v15, 0.0  ;;  %v1395_v15 = vld [vmem:[%s3889_s5 + $0xa0] sm:$0xff] }
 0x345   : > { %v1031_v13 = vpop.f32.mrf.mxu1 }
 0x346   : > { %v3484_v18 = vpop.f32.mrf.mxu3  ;;  %v1032_v20 = vadd.f32 %v1031_v13, %v931_v27 }
 0x347   : > { %v1225_v60 = vpop.f32.mrf.mxu2  ;;  %v936_v63 = vpop.f32.mrf.mxu0 }
 0x348   : > { %v1287_v61 = vadd.f32 %v1225_v60, %v1030_v56  ;;  %1484 = vperm.xlu2 %2798, %v1390_v57   ;;  %v1937_v56 = vld [vmem:[#allocation3 + $0x38] sm:$0xff] }
 0x34a   : > { %v1323_v35 = vadd.f32 %v3330_v19, %v1287_v61 }
 0x34c   : > { %v1355_v1 = vmax.f32 %v1323_v35, 0.0 }
 0x34d   : > { %v1034_v43 = vpop.f32.mrf.mxu1 }
 0x34e   : > { %v3487_v23 = vpop.f32.mrf.mxu3  ;;  %v1579_v0 = vmul.f32 %v1470_v45, %v1355_v1  ;;  %v1035_v47 = vadd.f32 %v1034_v43, %v934_v41  ;;  %v1042_v43 = vadd.f32 %v3469_v42, %v3213_v54 }
 0x34f   : > { %2733 = vmatmul.msk.bf16.gmra.mxu0 %vm1599_vm5, %v2275_v52  ;;  %v1227_v25 = vpop.f32.mrf.mxu2 }
 0x350   : > { %1697 = vrot.lane.b32.xlu2 %v1579_v0, %s2813_s29  ;;  %1621 = vst.msk [vmem:[#allocation3 + $0x79] sm:$0xff] %vm1608_vm6, %v1579_v0  ;;  %v1288_v32 = vadd.f32 %v1227_v25, %v1032_v20  ;;  %v1394_v20 = vld [vmem:[%s3889_s5 + $0x98] sm:$0xff] }
 0x352   : > { %v1324_v46 = vadd.f32 %v3330_v19, %v1288_v32 }
 0x353   : > { %2703 = vmatmul.msk.bf16.gmra.mxu2 %vm445_vm4, %v1126_v2 }
 0x354   : > { %v1356_v7 = vmax.f32 %v1324_v46, 0.0 }
 0x356   : > { %v3496_v6 = vpop.f32.mrf.mxu3 }
 0x357   : > { %v1230_v34 = vpop.f32.mrf.mxu2 }
 0x358   : > { %1494 = vperm.xlu2 %2798, %v1392_v3   ;;  %v1289_v52 = vadd.f32 %v1230_v34, %v1035_v47 }
 0x35a   : > { %v1325_v45 = vadd.f32 %v3330_v19, %v1289_v52 }
 0x35c   : > { %v1357_v10 = vmax.f32 %v1325_v45, 0.0 }
 0x35e   : > { %v3498_v8 = vpop.f32.mrf.mxu3 }
 0x35f   : > { %v1232_v61 = vpop.f32.mrf.mxu2 }
 0x366   : > { %v3500_v5 = vpop.f32.mrf.mxu3 }
 0x36e   : > { %v3502_v9 = vpop.f32.mrf.mxu3 }
 0x371   : > { %v1686_v14 = vpop.permute.xlu2 %1685 }
 0x372   : > { %1776 = vst.msk [vmem:[#allocation3 + $0x48] sm:$0xff] %vm1769_vm8, %v1686_v14 }
 0x376   : > { %v3506_v16 = vpop.f32.mrf.mxu3 }
 0x37a   : > { %v1465_v22 = vpop.permute.xlu2 %1464 }
 0x37b   : > { %v1578_v24 = vmul.f32 %v1465_v22, %v1354_v21 }
 0x37d   : > { %1620 = vst.msk [vmem:[#allocation3 + $0x71] sm:$0xff] %vm1608_vm6, %v1578_v24  ;;  %1824 = vrot.lane.b32.xlu0 %v1578_v24, %s2816_s18  ;;  %1695 = vrot.lane.b32.xlu1 %v1578_v24, %s2813_s29  ;;  %v1235_v24 = vpop.f32.mrf.mxu2 }
 0x37e   : > { %v3511_v26 = vpop.f32.mrf.mxu3 }
 0x385   : > { %1499 = vperm.xlu0 %2796, %v1393_v28   ;;  %1826 = vrot.lane.b32.xlu1 %v1579_v0, %s2816_s18  ;;  %v1036_v0 = vpop.f32.mrf.mxu1 }
 0x386   : > { %v3517_v49 = vpop.f32.mrf.mxu3  ;;  %v1037_v3 = vadd.f32 %v1036_v0, %v936_v63 }
 0x388   : > { %v1690_v36 = vpop.permute.xlu2 %1689  ;;  %v1290_v11 = vadd.f32 %v1232_v61, %v1037_v3 }
 0x389   : > { %1778 = vst.msk [vmem:[#allocation3 + $0x58] sm:$0xff] %vm1769_vm8, %v1690_v36  ;;  %v1815_v37 = vpop.permute.xlu1 %1814  ;;  %v1040_v36 = vadd.f32 %v3459_v29, %v3205_v51 }
 0x38a   : > { %1905 = vst.msk [vmem:[#allocation3 + $0x47] sm:$0xff] %vm1898_vm9, %v1815_v37  ;;  %v1326_v25 = vadd.f32 %v3330_v19, %v1290_v11  ;;  %v1237_v37 = vpop.f32.mrf.mxu2 }
 0x38b   : > { %v1291_v46 = vadd.f32 %v1235_v24, %v1040_v36 }
 0x38c   : > { %v1358_v28 = vmax.f32 %v1326_v25, 0.0  ;;  %v3587_v25 = vld [vmem:[%s3888_s4] ss:$0 sm:$0xff] }
 0x38e   : > { %v3522_v48 = vpop.f32.mrf.mxu3 }
 0x391   : > { %v1817_v55 = vpop.permute.xlu0 %1816  ;;  %v1475_v57 = vpop.permute.xlu2 %1474  ;;  %v1938_v60 = vld [vmem:[#allocation3 + $0x40] sm:$0xff] }
 0x392   : > { %v1580_v35 = vmul.f32 %v1475_v57, %v1356_v7  ;;  %v1688_v1 = vpop.permute.xlu1 %1687  ;;  %v1966_v62 = vpack.c.bf16 %v1938_v60, %v1937_v56  ;;  %v1292_v57 = vadd.f32 %v1237_v37, %v1042_v43  ;;  %v1397_v56 = vld [vmem:[%s3889_s5 + $0xb0] sm:$0xff]  ;;  %v1327_v60 = vadd.f32 %v3330_v19, %v1291_v46 }
 0x393   : > { %1777 = vst.msk [vmem:[#allocation3 + $0x50] sm:$0xff] %vm1769_vm8, %v1688_v1 }
 0x394   : > { %1622 = vst.msk [vmem:[#allocation3 + $0x81] sm:$0xff] %vm1608_vm6, %v1580_v35  ;;  %1828 = vrot.lane.b32.xlu0 %v1580_v35, %s2816_s18  ;;  %1699 = vrot.lane.b32.xlu1 %v1580_v35, %s2813_s29  ;;  %v1328_v54 = vadd.f32 %v3330_v19, %v1292_v57  ;;  %v1359_v61 = vmax.f32 %v1327_v60, 0.0 }
 0x395   : > { %1906 = vst.msk [vmem:[#allocation3 + $0x4f] sm:$0xff] %vm1898_vm9, %v1817_v55  ;;  %2713 = vmatmul.msk.bf16.gmra.mxu3 %vm1599_vm5, %v1966_v62  ;;  %2734 = vmatmul.msk.bf16.gmra.mxu0 %vm1599_vm5, %v1966_v62 }
 0x396   : > { %2755 = vmatmul.msk.bf16.gmra.mxu1 %vm1599_vm5, %v1966_v62  ;;  %v3533_v2 = vpop.f32.mrf.mxu3  ;;  %v1360_v62 = vmax.f32 %v1328_v54, 0.0  ;;  %v1047_v54 = vadd.f32 %v3487_v23, %v3227_v4 }
 0x399   : > { %v1480_v14 = vpop.permute.xlu0 %1479 }
 0x39a   : > { %v1581_v21 = vmul.f32 %v1480_v14, %v1357_v10  ;;  %v1694_v22 = vpop.permute.xlu2 %1693  ;;  %v1396_v10 = vld [vmem:[%s3889_s5 + $0xa8] sm:$0xff]  ;;  %v1399_v14 = vld [vmem:[%s3889_s5 + $0xc0] sm:$0xff] }
 0x39b   : > { %1780 = vst.msk [vmem:[#allocation3 + $0x68] sm:$0xff] %vm1769_vm8, %v1694_v22 }
 0x39c   : > { %1623 = vst.msk [vmem:[#allocation3 + $0x89] sm:$0xff] %vm1608_vm6, %v1581_v21  ;;  %1701 = vrot.lane.b32.xlu2 %v1581_v21, %s2813_s29  ;;  %1509 = vperm.xlu0 %2796, %v1395_v15   ;;  %v1939_v7 = vld [vmem:[#allocation3 + $0x48] sm:$0xff] }
 0x39d   : > { %1830 = vrot.lane.b32.xlu1 %v1581_v21, %s2816_s18 }
 0x39e   : > { %v3543_v27 = vpop.f32.mrf.mxu3 }
 0x3a0   : > { %v1819_v13 = vpop.permute.xlu1 %1818 }
 0x3a1   : > { %1907 = vst.msk [vmem:[#allocation3 + $0x57] sm:$0xff] %vm1898_vm9, %v1819_v13 }
 0x3a2   : > { %v1485_v32 = vpop.permute.xlu2 %1484 }
 0x3a3   : > { %v1582_v34 = vmul.f32 %v1485_v32, %v1358_v28 }
 0x3a4   : > { %1504 = vperm.xlu2 %2798, %v1394_v20  }
 0x3a5   : > { %1624 = vst.msk [vmem:[#allocation3 + $0x91] sm:$0xff] %vm1608_vm6, %v1582_v34  ;;  %1832 = vrot.lane.b32.xlu0 %v1582_v34, %s2816_s18  ;;  %1703 = vrot.lane.b32.xlu1 %v1582_v34, %s2813_s29 }
 0x3a6   : > { %v3554_v41 = vpop.f32.mrf.mxu3 }
 0x3a8   : > { %v1821_v47 = vpop.permute.xlu0 %1820  ;;  %v1692_v52 = vpop.permute.xlu1 %1691  ;;  %v1940_v55 = vld [vmem:[#allocation3 + $0x50] sm:$0xff] }
 0x3a9   : > { %1779 = vst.msk [vmem:[#allocation3 + $0x60] sm:$0xff] %vm1769_vm8, %v1692_v52  ;;  %v1967_v51 = vpack.c.bf16 %v1940_v55, %v1939_v7  ;;  %v1240_v7 = vpop.f32.mrf.mxu2  ;;  %v1045_v55 = vadd.f32 %v3484_v18, %v3218_v59 }
 0x3aa   : > { %v1698_v29 = vpop.permute.xlu2 %1697  ;;  %1908 = vst.msk [vmem:[#allocation3 + $0x5f] sm:$0xff] %vm1898_vm9, %v1821_v47 }
 0x3ab   : > { %1782 = vst.msk [vmem:[#allocation3 + $0x78] sm:$0xff] %vm1769_vm8, %v1698_v29  ;;  %2714 = vmatmul.msk.bf16.gmra.mxu3 %vm1599_vm5, %v1967_v51  ;;  %2735 = vmatmul.msk.bf16.gmra.mxu0 %vm1599_vm5, %v1967_v51  ;;  %v1293_v57 = vadd.f32 %v1240_v7, %v1045_v55  ;;  %v1055_v55 = vadd.f32 %v3500_v5, %v3257_v30 }
 0x3ac   : > { %2756 = vmatmul.msk.bf16.gmra.mxu1 %vm1599_vm5, %v1967_v51  ;;  %v2163_v11 = vpop.f32.mrf.mxu0 }
 0x3ad   : > { %1519 = vperm.xlu0 %2796, %v1397_v56   ;;  %v1329_v60 = vadd.f32 %v3330_v19, %v1293_v57 }
 0x3ae   : > { %v3569_v42 = vpop.f32.mrf.mxu3 }
 0x3b0   : > { %v1490_v35 = vpop.permute.xlu0 %1489 }
 0x3b1   : > { %v1583_v1 = vmul.f32 %v1490_v35, %v1359_v61  ;;  %v1941_v15 = vld [vmem:[#allocation3 + $0x58] sm:$0xff]  ;;  %v1242_v56 = vpop.f32.mrf.mxu2  ;;  %v1361_v35 = vmax.f32 %v1329_v60, 0.0 }
 0x3b2   : > { %v1495_v63 = vpop.permute.xlu2 %1494  ;;  %v1823_v45 = vpop.permute.xlu1 %1822  ;;  %v1294_v61 = vadd.f32 %v1242_v56, %v1047_v54 }
 0x3b3   : > { %1625 = vst.msk [vmem:[#allocation3 + $0x99] sm:$0xff] %vm1608_vm6, %v1583_v1  ;;  %v1584_v0 = vmul.f32 %v1495_v63, %v1360_v62  ;;  %1705 = vrot.lane.b32.xlu2 %v1583_v1, %s2813_s29  ;;  %1834 = vrot.lane.b32.xlu1 %v1583_v1, %s2816_s18 }
 0x3b4   : > { %1909 = vst.msk [vmem:[#allocation3 + $0x67] sm:$0xff] %vm1898_vm9, %v1823_v45  ;;  %v2165_v36 = vpop.f32.mrf.mxu0  ;;  %v1330_v63 = vadd.f32 %v3330_v19, %v1294_v61 }
 0x3b5   : > { %1626 = vst.msk [vmem:[#allocation3 + $0xa1] sm:$0xff] %vm1608_vm6, %v1584_v0  ;;  %1836 = vrot.lane.b32.xlu0 %v1584_v0, %s2816_s18 }
 0x3b6   : > { %v2059_v3 = vpop.f32.mrf.mxu3  ;;  %v1362_v4 = vmax.f32 %v1330_v63, 0.0 }
 0x3b7   : > { %v2164_v24 = vadd.f32 %v2163_v11, %v2059_v3  ;;  %v1398_v3 = vld [vmem:[%s3889_s5 + $0xb8] sm:$0xff] }
 0x3b9   : > { %v1245_v45 = vpop.f32.mrf.mxu2 }
 0x3bb   : > { %1514 = vperm.xlu2 %2798, %v1396_v10   ;;  %1707 = vrot.lane.b32.xlu1 %v1584_v0, %s2813_s29  ;;  %v1942_v21 = vld [vmem:[#allocation3 + $0x60] sm:$0xff] }
 0x3bc   : > { %v1968_v22 = vpack.c.bf16 %v1942_v21, %v1941_v15  ;;  %v1050_v15 = vadd.f32 %v3496_v6, %v3233_v12  ;;  %v1052_v6 = vadd.f32 %v3498_v8, %v3246_v17 }
 0x3bd   : > { %1529 = vperm.xlu0 %2796, %v1399_v14  }
 0x3be   : > { %2715 = vmatmul.msk.bf16.gmra.mxu3 %vm1599_vm5, %v1968_v22  ;;  %2736 = vmatmul.msk.bf16.gmra.mxu0 %vm1599_vm5, %v1968_v22  ;;  %v2364_v13 = vpop.f32.mrf.mxu1  ;;  %v2061_v32 = vpop.f32.mrf.mxu3 }
 0x3bf   : > { %2757 = vmatmul.msk.bf16.gmra.mxu1 %vm1599_vm5, %v1968_v22  ;;  %v2444_v28 = vadd.f32 %v2364_v13, %v2164_v24  ;;  %v2166_v37 = vadd.f32 %v2165_v36, %v2061_v32  ;;  %v1295_v22 = vadd.f32 %v1245_v45, %v1050_v15 }
 0x3c1   : > { %v2480_v20 = vadd.f32 %v3587_v25, %v2444_v28  ;;  %v1247_v21 = vpop.f32.mrf.mxu2  ;;  %v1401_v28 = vld [vmem:[%s3889_s5 + $0xd0] sm:$0xff]  ;;  %v1331_v12 = vadd.f32 %v3330_v19, %v1295_v22 }
 0x3c3   : > { %v2512_v34 = vmax.f32 %v2480_v20, 0.0  ;;  %v1296_v20 = vadd.f32 %v1247_v21, %v1052_v6 }
 0x3c5   : > { %2544 = vst.msk [vmem:[%s3598_s7] sm:$0xff] %vm1608_vm6, %v2512_v34  ;;  %v1363_v34 = vmax.f32 %v1331_v12, 0.0  ;;  %v1332_v7 = vadd.f32 %v3330_v19, %v1296_v20 }
 0x3c6   : > { %v2366_v43 = vpop.f32.mrf.mxu1  ;;  %v2064_v32 = vpop.f32.mrf.mxu3 }
 0x3c7   : > { %v2445_v46 = vadd.f32 %v2366_v43, %v2166_v37 }
 0x3c9   : > { %v2481_v47 = vadd.f32 %v3587_v25, %v2445_v46  ;;  %v1250_v37 = vpop.f32.mrf.mxu2  ;;  %v2168_v46 = vpop.f32.mrf.mxu0 }
 0x3ca   : > { %v2169_v17 = vadd.f32 %v2168_v46, %v2064_v32  ;;  %v1297_v56 = vadd.f32 %v1250_v37, %v1055_v55  ;;  %v1402_v32 = vld [vmem:[%s3889_s5 + $0xd8] sm:$0xff]  ;;  %v3680_v37 = vld [vmem:[%s3886_s2] ss:$0 sm:$0xff] }
 0x3cb   : > { %v2513_v52 = vmax.f32 %v2481_v47, 0.0 }
 0x3cd   : > { %2545 = vst.msk [vmem:[%s3598_s7 + $0x8] sm:$0xff] %vm1608_vm6, %v2513_v52 }
 0x3ce   : > { %v2066_v60 = vpop.f32.mrf.mxu3 }
 0x3d1   : > { %v3651_v5 = vpop.f32.mrf.mxu2  ;;  %v2170_v45 = vpop.f32.mrf.mxu0 }
 0x3d9   : > { %v1255_v22 = vpop.f32.mrf.mxu2 }
 0x3ef   : > { %v1825_v51 = vpop.permute.xlu0 %1824  ;;  %v1696_v29 = vpop.permute.xlu1 %1695 }
 0x3f0   : > { %1781 = vst.msk [vmem:[#allocation3 + $0x70] sm:$0xff] %vm1769_vm8, %v1696_v29 }
 0x3f1   : > { %1910 = vst.msk [vmem:[#allocation3 + $0x6f] sm:$0xff] %vm1898_vm9, %v1825_v51  ;;  %v1364_v51 = vmax.f32 %v1332_v7, 0.0 }
 0x3f6   : > { %v1702_v1 = vpop.permute.xlu2 %1701 }
 0x3f7   : > { %v1500_v62 = vpop.permute.xlu0 %1499  ;;  %1784 = vst.msk [vmem:[#allocation3 + $0x88] sm:$0xff] %vm1769_vm8, %v1702_v1  ;;  %v1827_v59 = vpop.permute.xlu1 %1826 }
 0x3f8   : > { %v1585_v18 = vmul.f32 %v1500_v62, %v1361_v35  ;;  %1911 = vst.msk [vmem:[#allocation3 + $0x77] sm:$0xff] %vm1898_vm9, %v1827_v59  ;;  %v1943_v10 = vld [vmem:[#allocation3 + $0x68] sm:$0xff]  ;;  %v1400_v35 = vld [vmem:[%s3889_s5 + $0xc8] sm:$0xff] }
 0x3fa   : > { %1627 = vst.msk [vmem:[#allocation3 + $0xa9] sm:$0xff] %vm1608_vm6, %v1585_v18  ;;  %1709 = vrot.lane.b32.xlu2 %v1585_v18, %s2813_s29  ;;  %1838 = vrot.lane.b32.xlu1 %v1585_v18, %s2816_s18 }
 0x3fe   : > { %v1505_v23 = vpop.permute.xlu2 %1504 }
 0x3ff   : > { %v1586_v0 = vmul.f32 %v1505_v23, %v1362_v4  ;;  %v1944_v11 = vld [vmem:[#allocation3 + $0x70] sm:$0xff]  ;;  %v1333_v4 = vadd.f32 %v3330_v19, %v1297_v56  ;;  %v2171_v23 = vadd.f32 %v2170_v45, %v2066_v60 }
 0x400   : > { %v1969_v14 = vpack.c.bf16 %v1944_v11, %v1943_v10  ;;  %v1403_v10 = vld [vmem:[%s3889_s5 + $0xe0] sm:$0xff] }
 0x401   : > { %1628 = vst.msk [vmem:[#allocation3 + $0xb1] sm:$0xff] %vm1608_vm6, %v1586_v0  ;;  %1840 = vrot.lane.b32.xlu0 %v1586_v0, %s2816_s18  ;;  %v1365_v11 = vmax.f32 %v1333_v4, 0.0 }
 0x402   : > { %1524 = vperm.xlu2 %2798, %v1398_v3   ;;  %1711 = vrot.lane.b32.xlu1 %v1586_v0, %s2813_s29 }
 0x403   : > { %2716 = vmatmul.msk.bf16.gmra.mxu3 %vm1599_vm5, %v1969_v14  ;;  %2737 = vmatmul.msk.bf16.gmra.mxu0 %vm1599_vm5, %v1969_v14 }
 0x404   : > { %2758 = vmatmul.msk.bf16.gmra.mxu1 %vm1599_vm5, %v1969_v14 }
 0x406   : > { %v1829_v24 = vpop.permute.xlu0 %1828  ;;  %v1700_v13 = vpop.permute.xlu1 %1699 }
 0x407   : > { %1783 = vst.msk [vmem:[#allocation3 + $0x80] sm:$0xff] %vm1769_vm8, %v1700_v13  ;;  %v1060_v13 = vadd.f32 %v3506_v16, %v3285_v33 }
 0x408   : > { %1912 = vst.msk [vmem:[#allocation3 + $0x7f] sm:$0xff] %vm1898_vm9, %v1829_v24 }
 0x409   : > { %1539 = vperm.xlu0 %2796, %v1401_v28   ;;  %v2173_v28 = vpop.f32.mrf.mxu0  ;;  %v1299_v6 = vadd.f32 %v1255_v22, %v1060_v13 }
 0x40d   : > { %v1706_v36 = vpop.permute.xlu2 %1705 }
 0x40e   : > { %v1510_v43 = vpop.permute.xlu0 %1509  ;;  %1786 = vst.msk [vmem:[#allocation3 + $0x98] sm:$0xff] %vm1769_vm8, %v1706_v36 }
 0x40f   : > { %v1587_v47 = vmul.f32 %v1510_v43, %v1363_v34  ;;  %v1831_v52 = vpop.permute.xlu1 %1830  ;;  %v1945_v59 = vld [vmem:[#allocation3 + $0x78] sm:$0xff]  ;;  %v1335_v43 = vadd.f32 %v3680_v37, %v1299_v6  ;;  %v1257_v6 = vpop.f32.mrf.mxu2 }
 0x410   : > { %1913 = vst.msk [vmem:[#allocation3 + $0x87] sm:$0xff] %vm1898_vm9, %v1831_v52 }
 0x411   : > { %1629 = vst.msk [vmem:[#allocation3 + $0xb9] sm:$0xff] %vm1608_vm6, %v1587_v47  ;;  %1713 = vrot.lane.b32.xlu2 %v1587_v47, %s2813_s29  ;;  %1842 = vrot.lane.b32.xlu1 %v1587_v47, %s2816_s18 }
 0x413   : > { %v2369_v8 = vpop.f32.mrf.mxu1 }
 0x414   : > { %v2446_v57 = vadd.f32 %v2369_v8, %v2169_v17  ;;  %v1367_v8 = vmax.f32 %v1335_v43, 0.0  ;;  %v1065_v43 = vadd.f32 %v3517_v49, %v3293_v39  ;;  %v1067_v39 = vadd.f32 %v3522_v48, %v3295_v40 }
 0x415   : > { %v1515_v29 = vpop.permute.xlu2 %1514 }
 0x416   : > { %v2482_v54 = vadd.f32 %v3587_v25, %v2446_v57  ;;  %v1588_v61 = vmul.f32 %v1515_v29, %v1364_v51  ;;  %v2175_v57 = vpop.f32.mrf.mxu0 }
 0x417   : > { %v1833_v1 = vpop.permute.xlu0 %1832  ;;  %v1704_v62 = vpop.permute.xlu1 %1703  ;;  %v1946_v18 = vld [vmem:[#allocation3 + $0x80] sm:$0xff] }
 0x418   : > { %v2514_v63 = vmax.f32 %v2482_v54, 0.0  ;;  %1630 = vst.msk [vmem:[#allocation3 + $0xc1] sm:$0xff] %vm1608_vm6, %v1588_v61  ;;  %1844 = vrot.lane.b32.xlu0 %v1588_v61, %s2816_s18  ;;  %v1970_v30 = vpack.c.bf16 %v1946_v18, %v1945_v59  ;;  %v2069_v24 = vpop.f32.mrf.mxu3 }
 0x419   : > { %1785 = vst.msk [vmem:[#allocation3 + $0x90] sm:$0xff] %vm1769_vm8, %v1704_v62  ;;  %1534 = vperm.xlu2 %2798, %v1400_v35   ;;  %1715 = vrot.lane.b32.xlu1 %v1588_v61, %s2813_s29  ;;  %v2174_v34 = vadd.f32 %v2173_v28, %v2069_v24  ;;  %v1404_v62 = vld [vmem:[%s3889_s5 + $0xe8] sm:$0xff] }
 0x41a   : > { %2546 = vst.msk [vmem:[%s3598_s7 + $0x10] sm:$0xff] %vm1608_vm6, %v2514_v63  ;;  %2717 = vmatmul.msk.bf16.gmra.mxu3 %vm1599_vm5, %v1970_v30  ;;  %2738 = vmatmul.msk.bf16.gmra.mxu0 %vm1599_vm5, %v1970_v30 }
 0x41b   : > { %1914 = vst.msk [vmem:[#allocation3 + $0x8f] sm:$0xff] %vm1898_vm9, %v1833_v1  ;;  %v2371_v0 = vpop.f32.mrf.mxu1  ;;  %2759 = vmatmul.msk.bf16.gmra.mxu1 %vm1599_vm5, %v1970_v30 }
 0x41c   : > { %v2447_v3 = vadd.f32 %v2371_v0, %v2171_v23 }
 0x41e   : > { %v2483_v19 = vadd.f32 %v3587_v25, %v2447_v3  ;;  %v2178_v59 = vpop.f32.mrf.mxu0 }
 0x41f   : > { %v1520_v14 = vpop.permute.xlu0 %1519 }
 0x420   : > { %v2515_v15 = vmax.f32 %v2483_v19, 0.0  ;;  %v1589_v21 = vmul.f32 %v1520_v14, %v1365_v11  ;;  %1549 = vperm.xlu0 %2796, %v1403_v10   ;;  %v2071_v46 = vpop.f32.mrf.mxu3 }
 0x421   : > { %v2176_v29 = vadd.f32 %v2175_v57, %v2071_v46 }
 0x422   : > { %2547 = vst.msk [vmem:[%s3598_s7 + $0x18] sm:$0xff] %vm1608_vm6, %v2515_v15  ;;  %1717 = vrot.lane.b32.xlu2 %v1589_v21, %s2813_s29  ;;  %1846 = vrot.lane.b32.xlu1 %v1589_v21, %s2816_s18  ;;  %v1947_v52 = vld [vmem:[#allocation3 + $0x88] sm:$0xff]  ;;  %v1057_v15 = vadd.f32 %v3502_v9, %v3272_v31  ;;  %v1405_v31 = vld [vmem:[%s3889_s5 + $0xf0] sm:$0xff]  ;;  %v1062_v9 = vadd.f32 %v3511_v26, %v3290_v38 }
 0x423   : > { %1631 = vst.msk [vmem:[#allocation3 + $0xc9] sm:$0xff] %vm1608_vm6, %v1589_v21 }
 0x424   : > { %v1298_v21 = vadd.f32 %v3651_v5, %v1057_v15  ;;  %v1300_v5 = vadd.f32 %v1257_v6, %v1062_v9 }
 0x425   : > { %v1835_v12 = vpop.permute.xlu1 %1834 }
 0x426   : > { %1915 = vst.msk [vmem:[#allocation3 + $0x97] sm:$0xff] %vm1898_vm9, %v1835_v12  ;;  %v2180_v0 = vpop.f32.mrf.mxu0  ;;  %v1334_v24 = vadd.f32 %v3680_v37, %v1298_v21 }
 0x427   : > { %v1837_v20 = vpop.permute.xlu0 %1836 }
 0x428   : > { %v1366_v13 = vmax.f32 %v1334_v24, 0.0 }
 0x429   : > { %v2374_v36 = vpop.f32.mrf.mxu1 }
 0x42a   : > { %1544 = vperm.xlu2 %2798, %v1402_v32   ;;  %v2448_v33 = vadd.f32 %v2374_v36, %v2174_v34  ;;  %v1336_v36 = vadd.f32 %v3680_v37, %v1300_v5 }
 0x42c   : > { %v2484_v16 = vadd.f32 %v3587_v25, %v2448_v33 }
 0x42d   : > { %v1708_v47 = vpop.permute.xlu1 %1707  ;;  %v1948_v7 = vld [vmem:[#allocation3 + $0x90] sm:$0xff] }
 0x42e   : > { %v2516_v17 = vmax.f32 %v2484_v16, 0.0  ;;  %1787 = vst.msk [vmem:[#allocation3 + $0xa0] sm:$0xff] %vm1769_vm8, %v1708_v47  ;;  %v1971_v55 = vpack.c.bf16 %v1948_v7, %v1947_v52  ;;  %v2074_v35 = vpop.f32.mrf.mxu3  ;;  %v1368_v16 = vmax.f32 %v1336_v36, 0.0 }
 0x42f   : > { %v1530_v51 = vpop.permute.xlu0 %1529  ;;  %1916 = vst.msk [vmem:[#allocation3 + $0x9f] sm:$0xff] %vm1898_vm9, %v1837_v20  ;;  %v2179_v18 = vadd.f32 %v2178_v59, %v2074_v35  ;;  %v1260_v20 = vpop.f32.mrf.mxu2 }
 0x430   : > { %2548 = vst.msk [vmem:[%s3598_s7 + $0x20] sm:$0xff] %vm1608_vm6, %v2516_v17  ;;  %v1591_v56 = vmul.f32 %v1530_v51, %v1367_v8  ;;  %2718 = vmatmul.msk.bf16.gmra.mxu3 %vm1599_vm5, %v1971_v55  ;;  %2739 = vmatmul.msk.bf16.gmra.mxu0 %vm1599_vm5, %v1971_v55  ;;  %v1301_v33 = vadd.f32 %v1260_v20, %v1065_v43 }
 0x431   : > { %v2376_v60 = vpop.f32.mrf.mxu1  ;;  %2760 = vmatmul.msk.bf16.gmra.mxu1 %vm1599_vm5, %v1971_v55 }
 0x432   : > { %1633 = vst.msk [vmem:[#allocation3 + $0xd9] sm:$0xff] %vm1608_vm6, %v1591_v56  ;;  %1721 = vrot.lane.b32.xlu2 %v1591_v56, %s2813_s29  ;;  %v2449_v54 = vadd.f32 %v2376_v60, %v2176_v29  ;;  %v1337_v55 = vadd.f32 %v3680_v37, %v1301_v33 }
 0x434   : > { %v2485_v61 = vadd.f32 %v3587_v25, %v2449_v54  ;;  %v1369_v49 = vmax.f32 %v1337_v55, 0.0  ;;  %v2183_v54 = vpop.f32.mrf.mxu0 }
 0x436   : > { %v2517_v1 = vmax.f32 %v2485_v61, 0.0  ;;  %v2076_v4 = vpop.f32.mrf.mxu3  ;;  %v1949_v26 = vld [vmem:[#allocation3 + $0x98] sm:$0xff] }
 0x437   : > { %v2181_v3 = vadd.f32 %v2180_v0, %v2076_v4  ;;  %v1262_v52 = vpop.f32.mrf.mxu2  ;;  %v1070_v0 = vadd.f32 %v3533_v2, %v3301_v44 }
 0x438   : > { %2549 = vst.msk [vmem:[%s3598_s7 + $0x28] sm:$0xff] %vm1608_vm6, %v2517_v1  ;;  %v1302_v57 = vadd.f32 %v1262_v52, %v1067_v39 }
 0x43a   : > { %1554 = vperm.xlu2 %2798, %v1404_v62   ;;  %v1338_v35 = vadd.f32 %v3680_v37, %v1302_v57 }
 0x43c   : > { %v2379_v63 = vpop.f32.mrf.mxu1  ;;  %v1370_v62 = vmax.f32 %v1338_v35, 0.0 }
 0x43d   : > { %v2450_v30 = vadd.f32 %v2379_v63, %v2179_v18  ;;  %v1406_v18 = vld [vmem:[%s3889_s5 + $0xf8] sm:$0xff] }
 0x43f   : > { %v2486_v45 = vadd.f32 %v3587_v25, %v2450_v30  ;;  %v1265_v61 = vpop.f32.mrf.mxu2 }
 0x441   : > { %v2518_v23 = vmax.f32 %v2486_v45, 0.0  ;;  %v2079_v51 = vpop.f32.mrf.mxu3 }
 0x442   : > { %v2184_v1 = vadd.f32 %v2183_v54, %v2079_v51 }
 0x443   : > { %2550 = vst.msk [vmem:[%s3598_s7 + $0x30] sm:$0xff] %vm1608_vm6, %v2518_v23 }
 0x444   : > { %v2381_v10 = vpop.f32.mrf.mxu1 }
 0x445   : > { %v2451_v19 = vadd.f32 %v2381_v10, %v2181_v3  ;;  %v2185_v3 = vpop.f32.mrf.mxu0 }
 0x447   : > { %v2487_v11 = vadd.f32 %v3587_v25, %v2451_v19  ;;  %v1267_v10 = vpop.f32.mrf.mxu2 }
 0x449   : > { %v2519_v14 = vmax.f32 %v2487_v11, 0.0  ;;  %v2081_v45 = vpop.f32.mrf.mxu3  ;;  %v1072_v11 = vadd.f32 %v3543_v27, %v3311_v50 }
 0x44a   : > { %v2186_v19 = vadd.f32 %v2185_v3, %v2081_v45 }
 0x44b   : > { %2551 = vst.msk [vmem:[%s3598_s7 + $0x38] sm:$0xff] %vm1608_vm6, %v2519_v14  ;;  %v1303_v14 = vadd.f32 %v1265_v61, %v1070_v0  ;;  %v1304_v24 = vadd.f32 %v1267_v10, %v1072_v11  ;;  %v1075_v0 = vadd.f32 %v3554_v41, %v3313_v53 }
 0x44d   : > { %v1340_v27 = vadd.f32 %v3680_v37, %v1304_v24 }
 0x44f   : > { %v1372_v36 = vmax.f32 %v1340_v27, 0.0 }
 0x454   : > { %v1710_v22 = vpop.permute.xlu2 %1709 }
 0x455   : > { %1788 = vst.msk [vmem:[#allocation3 + $0xa8] sm:$0xff] %vm1769_vm8, %v1710_v22 }
 0x45c   : > { %v1525_v28 = vpop.permute.xlu2 %1524 }
 0x45d   : > { %v1590_v12 = vmul.f32 %v1525_v28, %v1366_v13 }
 0x45f   : > { %1632 = vst.msk [vmem:[#allocation3 + $0xd1] sm:$0xff] %vm1608_vm6, %v1590_v12  ;;  %1848 = vrot.lane.b32.xlu0 %v1590_v12, %s2816_s18  ;;  %1719 = vrot.lane.b32.xlu1 %v1590_v12, %s2813_s29 }
 0x467   : > { %1559 = vperm.xlu0 %2796, %v1405_v31   ;;  %1850 = vrot.lane.b32.xlu1 %v1591_v56, %s2816_s18  ;;  %v1339_v31 = vadd.f32 %v3680_v37, %v1303_v14 }
 0x469   : > { %v1371_v9 = vmax.f32 %v1339_v31, 0.0 }
 0x46b   : > { %v1714_v32 = vpop.permute.xlu2 %1713 }
 0x46c   : > { %1790 = vst.msk [vmem:[#allocation3 + $0xb8] sm:$0xff] %vm1769_vm8, %v1714_v32  ;;  %v1839_v34 = vpop.permute.xlu1 %1838  ;;  %v2188_v32 = vpop.f32.mrf.mxu0 }
 0x46d   : > { %1917 = vst.msk [vmem:[#allocation3 + $0xa7] sm:$0xff] %vm1898_vm9, %v1839_v34 }
 0x473   : > { %v1841_v46 = vpop.permute.xlu0 %1840  ;;  %v1535_v47 = vpop.permute.xlu2 %1534 }
 0x474   : > { %v1592_v7 = vmul.f32 %v1535_v47, %v1368_v16  ;;  %v1712_v38 = vpop.permute.xlu1 %1711  ;;  %v1950_v17 = vld [vmem:[#allocation3 + $0xa0] sm:$0xff]  ;;  %v2190_v55 = vpop.f32.mrf.mxu0 }
 0x475   : > { %1789 = vst.msk [vmem:[#allocation3 + $0xb0] sm:$0xff] %vm1769_vm8, %v1712_v38  ;;  %v1972_v8 = vpack.c.bf16 %v1950_v17, %v1949_v26 }
 0x476   : > { %1634 = vst.msk [vmem:[#allocation3 + $0xe1] sm:$0xff] %vm1608_vm6, %v1592_v7  ;;  %1852 = vrot.lane.b32.xlu0 %v1592_v7, %s2816_s18  ;;  %1723 = vrot.lane.b32.xlu1 %v1592_v7, %s2813_s29 }
 0x477   : > { %1918 = vst.msk [vmem:[#allocation3 + $0xaf] sm:$0xff] %vm1898_vm9, %v1841_v46  ;;  %2719 = vmatmul.msk.bf16.gmra.mxu3 %vm1599_vm5, %v1972_v8  ;;  %2740 = vmatmul.msk.bf16.gmra.mxu0 %vm1599_vm5, %v1972_v8 }
 0x478   : > { %2761 = vmatmul.msk.bf16.gmra.mxu1 %vm1599_vm5, %v1972_v8 }
 0x47b   : > { %v1540_v29 = vpop.permute.xlu0 %1539 }
 0x47c   : > { %v1593_v56 = vmul.f32 %v1540_v29, %v1369_v49  ;;  %v1718_v60 = vpop.permute.xlu2 %1717 }
 0x47d   : > { %1792 = vst.msk [vmem:[#allocation3 + $0xc8] sm:$0xff] %vm1769_vm8, %v1718_v60 }
 0x47e   : > { %1635 = vst.msk [vmem:[#allocation3 + $0xe9] sm:$0xff] %vm1608_vm6, %v1593_v56  ;;  %1725 = vrot.lane.b32.xlu2 %v1593_v56, %s2813_s29  ;;  %1854 = vrot.lane.b32.xlu1 %v1593_v56, %s2816_s18  ;;  %v1951_v44 = vld [vmem:[#allocation3 + $0xa8] sm:$0xff] }
 0x480   : > { %v2193_v54 = vpop.f32.mrf.mxu0 }
 0x481   : > { %v2384_v40 = vpop.f32.mrf.mxu1 }
 0x482   : > { %v2452_v48 = vadd.f32 %v2384_v40, %v2184_v1 }
 0x483   : > { %v1843_v59 = vpop.permute.xlu1 %1842 }
 0x484   : > { %v2488_v63 = vadd.f32 %v3587_v25, %v2452_v48  ;;  %v1545_v30 = vpop.permute.xlu2 %1544  ;;  %1919 = vst.msk [vmem:[#allocation3 + $0xb7] sm:$0xff] %vm1898_vm9, %v1843_v59 }
 0x485   : > { %v1594_v4 = vmul.f32 %v1545_v30, %v1370_v62 }
 0x486   : > { %v2520_v23 = vmax.f32 %v2488_v63, 0.0  ;;  %1564 = vperm.xlu2 %2798, %v1406_v18   ;;  %v2084_v5 = vpop.f32.mrf.mxu3 }
 0x487   : > { %1636 = vst.msk [vmem:[#allocation3 + $0xf1] sm:$0xff] %vm1608_vm6, %v1594_v4  ;;  %1727 = vrot.lane.b32.xlu0 %v1594_v4, %s2813_s29  ;;  %v2189_v46 = vadd.f32 %v2188_v32, %v2084_v5 }
 0x488   : > { %2552 = vst.msk [vmem:[%s3598_s7 + $0x40] sm:$0xff] %vm1608_vm6, %v2520_v23  ;;  %v2195_v59 = vpop.f32.mrf.mxu0  ;;  %v1270_v23 = vpop.f32.mrf.mxu2 }
 0x489   : > { %v2386_v15 = vpop.f32.mrf.mxu1  ;;  %v1305_v3 = vadd.f32 %v1270_v23, %v1075_v0 }
 0x48a   : > { %v2453_v21 = vadd.f32 %v2386_v15, %v2186_v19  ;;  %v1845_v22 = vpop.permute.xlu0 %1844  ;;  %v1077_v15 = vadd.f32 %v3569_v42, %v3317_v58 }
 0x48b   : > { %v1716_v13 = vpop.permute.xlu1 %1715  ;;  %v1952_v2 = vld [vmem:[#allocation3 + $0xb0] sm:$0xff]  ;;  %v1341_v11 = vadd.f32 %v3680_v37, %v1305_v3 }
 0x48c   : > { %v2489_v28 = vadd.f32 %v3587_v25, %v2453_v21  ;;  %v1722_v12 = vpop.permute.xlu2 %1721  ;;  %1791 = vst.msk [vmem:[#allocation3 + $0xc0] sm:$0xff] %vm1769_vm8, %v1716_v13  ;;  %v1973_v6 = vpack.c.bf16 %v1952_v2, %v1951_v44 }
 0x48d   : > { %1794 = vst.msk [vmem:[#allocation3 + $0xd8] sm:$0xff] %vm1769_vm8, %v1722_v12 }
 0x48e   : > { %v2521_v50 = vmax.f32 %v2489_v28, 0.0  ;;  %1920 = vst.msk [vmem:[#allocation3 + $0xbf] sm:$0xff] %vm1898_vm9, %v1845_v22  ;;  %1856 = vrot.lane.b32.xlu2 %v1594_v4, %s2816_s18  ;;  %2720 = vmatmul.msk.bf16.gmra.mxu3 %vm1599_vm5, %v1973_v6  ;;  %v2086_v38 = vpop.f32.mrf.mxu3  ;;  %v1373_v22 = vmax.f32 %v1341_v11, 0.0 }
 0x48f   : > { %2741 = vmatmul.msk.bf16.gmra.mxu0 %vm1599_vm5, %v1973_v6  ;;  %2762 = vmatmul.msk.bf16.gmra.mxu1 %vm1599_vm5, %v1973_v6  ;;  %v2191_v49 = vadd.f32 %v2190_v55, %v2086_v38 }
 0x490   : > { %2553 = vst.msk [vmem:[%s3598_s7 + $0x48] sm:$0xff] %vm1608_vm6, %v2521_v50  ;;  %v1272_v14 = vpop.f32.mrf.mxu2 }
 0x491   : > { %v1306_v21 = vadd.f32 %v1272_v14, %v1077_v15 }
 0x492   : > { %v1550_v20 = vpop.permute.xlu0 %1549 }
 0x493   : > { %v1595_v34 = vmul.f32 %v1550_v20, %v1371_v9  ;;  %v1342_v44 = vadd.f32 %v3680_v37, %v1306_v21 }
 0x494   : > { %v1555_v43 = vpop.permute.xlu2 %1554  ;;  %v1847_v33 = vpop.permute.xlu1 %1846 }
 0x495   : > { %1637 = vst.msk [vmem:[#allocation3 + $0xf9] sm:$0xff] %vm1608_vm6, %v1595_v34  ;;  %v1596_v16 = vmul.f32 %v1555_v43, %v1372_v36  ;;  %1729 = vrot.lane.b32.xlu1 %v1595_v34, %s2813_s29  ;;  %1858 = vrot.lane.b32.xlu0 %v1595_v34, %s2816_s18  ;;  %v1953_v17 = vld [vmem:[#allocation3 + $0xb8] sm:$0xff]  ;;  %v1374_v2 = vmax.f32 %v1342_v44, 0.0 }
 0x496   : > { %1921 = vst.msk [vmem:[#allocation3 + $0xc7] sm:$0xff] %vm1898_vm9, %v1847_v33 }
 0x497   : > { %1638 = vst.msk [vmem:[#allocation3 + $0x101] sm:$0xff] %vm1608_vm6, %v1596_v16  ;;  %v2198_v27 = vpop.f32.mrf.mxu0 }
 0x498   : > { %v2389_v47 = vpop.f32.mrf.mxu1 }
 0x499   : > { %v2454_v52 = vadd.f32 %v2389_v47, %v2189_v46 }
 0x49b   : > { %v2490_v7 = vadd.f32 %v3587_v25, %v2454_v52 }
 0x49d   : > { %v2522_v26 = vmax.f32 %v2490_v7, 0.0  ;;  %1860 = vrot.lane.b32.xlu0 %v1596_v16, %s2816_s18  ;;  %1731 = vrot.lane.b32.xlu1 %v1596_v16, %s2813_s29  ;;  %v1954_v8 = vld [vmem:[#allocation3 + $0xc0] sm:$0xff]  ;;  %v2089_v60 = vpop.f32.mrf.mxu3 }
 0x49e   : > { %v1974_v39 = vpack.c.bf16 %v1954_v8, %v1953_v17  ;;  %v2194_v61 = vadd.f32 %v2193_v54, %v2089_v60 }
 0x49f   : > { %2554 = vst.msk [vmem:[%s3598_s7 + $0x50] sm:$0xff] %vm1608_vm6, %v2522_v26  ;;  %v2200_v7 = vpop.f32.mrf.mxu0 }
 0x4a0   : > { %2721 = vmatmul.msk.bf16.gmra.mxu3 %vm1599_vm5, %v1974_v39  ;;  %2742 = vmatmul.msk.bf16.gmra.mxu0 %vm1599_vm5, %v1974_v39  ;;  %v2391_v57 = vpop.f32.mrf.mxu1 }
 0x4a1   : > { %v2455_v51 = vadd.f32 %v2391_v57, %v2191_v49  ;;  %2763 = vmatmul.msk.bf16.gmra.mxu1 %vm1599_vm5, %v1974_v39 }
 0x4a3   : > { %v2491_v29 = vadd.f32 %v3587_v25, %v2455_v51 }
 0x4a5   : > { %v2523_v56 = vmax.f32 %v2491_v29, 0.0  ;;  %v2091_v48 = vpop.f32.mrf.mxu3 }
 0x4a6   : > { %v2196_v18 = vadd.f32 %v2195_v59, %v2091_v48 }
 0x4a7   : > { %2555 = vst.msk [vmem:[%s3598_s7 + $0x58] sm:$0xff] %vm1608_vm6, %v2523_v56 }
 0x4ad   : > { %v2203_v51 = vpop.f32.mrf.mxu0 }
 0x4ae   : > { %v2394_v35 = vpop.f32.mrf.mxu1 }
 0x4af   : > { %v2456_v1 = vadd.f32 %v2394_v35, %v2194_v61 }
 0x4b1   : > { %v2492_v40 = vadd.f32 %v3587_v25, %v2456_v1 }
 0x4b3   : > { %v2524_v62 = vmax.f32 %v2492_v40, 0.0  ;;  %v2094_v50 = vpop.f32.mrf.mxu3 }
 0x4b4   : > { %v2199_v5 = vadd.f32 %v2198_v27, %v2094_v50 }
 0x4b5   : > { %2556 = vst.msk [vmem:[%s3598_s7 + $0x60] sm:$0xff] %vm1608_vm6, %v2524_v62 }
 0x4b6   : > { %v2396_v63 = vpop.f32.mrf.mxu1 }
 0x4b7   : > { %v2457_v30 = vadd.f32 %v2396_v63, %v2196_v18  ;;  %v2205_v18 = vpop.f32.mrf.mxu0 }
 0x4b9   : > { %v2493_v45 = vadd.f32 %v3587_v25, %v2457_v30 }
 0x4bb   : > { %v2525_v4 = vmax.f32 %v2493_v45, 0.0  ;;  %v2096_v36 = vpop.f32.mrf.mxu3 }
 0x4bc   : > { %v2201_v38 = vadd.f32 %v2200_v7, %v2096_v36 }
 0x4bd   : > { %2557 = vst.msk [vmem:[%s3598_s7 + $0x68] sm:$0xff] %vm1608_vm6, %v2525_v4 }
 0x4d1   : > { %v1849_v10 = vpop.permute.xlu0 %1848  ;;  %v1720_v19 = vpop.permute.xlu1 %1719 }
 0x4d2   : > { %1793 = vst.msk [vmem:[#allocation3 + $0xd0] sm:$0xff] %vm1769_vm8, %v1720_v19 }
 0x4d3   : > { %1922 = vst.msk [vmem:[#allocation3 + $0xcf] sm:$0xff] %vm1898_vm9, %v1849_v10 }
 0x4d8   : > { %v1726_v24 = vpop.permute.xlu2 %1725 }
 0x4d9   : > { %v1560_v13 = vpop.permute.xlu0 %1559  ;;  %1796 = vst.msk [vmem:[#allocation3 + $0xe8] sm:$0xff] %vm1769_vm8, %v1726_v24  ;;  %v1851_v53 = vpop.permute.xlu1 %1850 }
 0x4da   : > { %v1597_v41 = vmul.f32 %v1560_v13, %v1373_v22  ;;  %1923 = vst.msk [vmem:[#allocation3 + $0xd7] sm:$0xff] %vm1898_vm9, %v1851_v53  ;;  %v1955_v28 = vld [vmem:[#allocation3 + $0xc8] sm:$0xff] }
 0x4dc   : > { %1639 = vst.msk [vmem:[#allocation3 + $0x109] sm:$0xff] %vm1608_vm6, %v1597_v41  ;;  %1733 = vrot.lane.b32.xlu2 %v1597_v41, %s2813_s29  ;;  %1862 = vrot.lane.b32.xlu1 %v1597_v41, %s2816_s18 }
 0x4e0   : > { %v1565_v58 = vpop.permute.xlu2 %1564 }
 0x4e1   : > { %v1598_v42 = vmul.f32 %v1565_v58, %v1374_v2  ;;  %v1956_v12 = vld [vmem:[#allocation3 + $0xd0] sm:$0xff] }
 0x4e2   : > { %v1975_v6 = vpack.c.bf16 %v1956_v12, %v1955_v28 }
 0x4e3   : > { %1640 = vst.msk [vmem:[#allocation3 + $0x111] sm:$0xff] %vm1608_vm6, %v1598_v42  ;;  %1864 = vrot.lane.b32.xlu0 %v1598_v42, %s2816_s18 }
 0x4e4   : > { %1735 = vrot.lane.b32.xlu2 %v1598_v42, %s2813_s29  ;;  %2722 = vmatmul.msk.bf16.gmra.mxu3 %vm1599_vm5, %v1975_v6 }
 0x4e5   : > { %2743 = vmatmul.msk.bf16.gmra.mxu0 %vm1599_vm5, %v1975_v6  ;;  %2764 = vmatmul.msk.bf16.gmra.mxu1 %vm1599_vm5, %v1975_v6 }
 0x4e8   : > { %v1853_v37 = vpop.permute.xlu0 %1852  ;;  %v1724_v31 = vpop.permute.xlu1 %1723 }
 0x4e9   : > { %1795 = vst.msk [vmem:[#allocation3 + $0xe0] sm:$0xff] %vm1769_vm8, %v1724_v31  ;;  %v1857_v46 = vpop.permute.xlu2 %1856 }
 0x4ea   : > { %1924 = vst.msk [vmem:[#allocation3 + $0xdf] sm:$0xff] %vm1898_vm9, %v1853_v37 }
 0x4f0   : > { %v1855_v9 = vpop.permute.xlu1 %1854 }
 0x4f1   : > { %1925 = vst.msk [vmem:[#allocation3 + $0xe7] sm:$0xff] %vm1898_vm9, %v1855_v9  ;;  %v1957_v33 = vld [vmem:[#allocation3 + $0xd8] sm:$0xff] }
 0x4f4   : > { %v2208_v3 = vpop.f32.mrf.mxu0 }
 0x4f5   : > { %v2399_v20 = vpop.f32.mrf.mxu1 }
 0x4f6   : > { %v2458_v32 = vadd.f32 %v2399_v20, %v2199_v5 }
 0x4f8   : > { %v2494_v34 = vadd.f32 %v3587_v25, %v2458_v32  ;;  %v1958_v16 = vld [vmem:[#allocation3 + $0xe0] sm:$0xff] }
 0x4f9   : > { %v1728_v43 = vpop.permute.xlu0 %1727  ;;  %v1976_v52 = vpack.c.bf16 %v1958_v16, %v1957_v33 }
 0x4fa   : > { %v2526_v47 = vmax.f32 %v2494_v34, 0.0  ;;  %1797 = vst.msk [vmem:[#allocation3 + $0xf0] sm:$0xff] %vm1769_vm8, %v1728_v43  ;;  %v2099_v39 = vpop.f32.mrf.mxu3 }
 0x4fb   : > { %1926 = vst.msk [vmem:[#allocation3 + $0xef] sm:$0xff] %vm1898_vm9, %v1857_v46  ;;  %2723 = vmatmul.msk.bf16.gmra.mxu3 %vm1599_vm5, %v1976_v52  ;;  %2744 = vmatmul.msk.bf16.gmra.mxu0 %vm1599_vm5, %v1976_v52  ;;  %v2204_v29 = vadd.f32 %v2203_v51, %v2099_v39 }
 0x4fc   : > { %2558 = vst.msk [vmem:[%s3598_s7 + $0x70] sm:$0xff] %vm1608_vm6, %v2526_v47  ;;  %2765 = vmatmul.msk.bf16.gmra.mxu1 %vm1599_vm5, %v1976_v52  ;;  %v2210_v22 = vpop.f32.mrf.mxu0 }
 0x4fd   : > { %v2401_v26 = vpop.f32.mrf.mxu1 }
 0x4fe   : > { %v2459_v17 = vadd.f32 %v2401_v26, %v2201_v38 }
 0x500   : > { %v2495_v8 = vadd.f32 %v3587_v25, %v2459_v17  ;;  %v2273_v17 = vld [vmem:[#allocation3 + $0x118] sm:$0xff] }
 0x502   : > { %v2527_v55 = vmax.f32 %v2495_v8, 0.0  ;;  %v2101_v1 = vpop.f32.mrf.mxu3  ;;  %v1959_v40 = vld [vmem:[#allocation3 + $0xe8] sm:$0xff]  ;;  %v2274_v8 = vld [vmem:[#allocation3 + $0x120] sm:$0xff] }
 0x503   : > { %v2206_v63 = vadd.f32 %v2205_v18, %v2101_v1  ;;  %v2290_v39 = vpack.c.bf16 %v2274_v8, %v2273_v17 }
 0x504   : > { %2559 = vst.msk [vmem:[%s3598_s7 + $0x78] sm:$0xff] %vm1608_vm6, %v2527_v55 }
 0x507   : > { %v1859_v49 = vpop.permute.xlu0 %1858  ;;  %v1730_v57 = vpop.permute.xlu1 %1729 }
 0x508   : > { %1798 = vst.msk [vmem:[#allocation3 + $0xf8] sm:$0xff] %vm1769_vm8, %v1730_v57 }
 0x509   : > { %1927 = vst.msk [vmem:[#allocation3 + $0xf7] sm:$0xff] %vm1898_vm9, %v1859_v49 }
 0x50c   : > { %v2404_v56 = vpop.f32.mrf.mxu1  ;;  %v2213_v50 = vpop.f32.mrf.mxu0 }
 0x50d   : > { %v2460_v60 = vadd.f32 %v2404_v56, %v2204_v29 }
 0x50f   : > { %v2496_v54 = vadd.f32 %v3587_v25, %v2460_v60  ;;  %v1861_v61 = vpop.permute.xlu0 %1860  ;;  %v1732_v35 = vpop.permute.xlu1 %1731 }
 0x510   : > { %1799 = vst.msk [vmem:[#allocation3 + $0x100] sm:$0xff] %vm1769_vm8, %v1732_v35  ;;  %v1960_v48 = vld [vmem:[#allocation3 + $0xf0] sm:$0xff] }
 0x511   : > { %v2528_v62 = vmax.f32 %v2496_v54, 0.0  ;;  %1928 = vst.msk [vmem:[#allocation3 + $0xff] sm:$0xff] %vm1898_vm9, %v1861_v61  ;;  %v1977_v59 = vpack.c.bf16 %v1960_v48, %v1959_v40  ;;  %v2104_v23 = vpop.f32.mrf.mxu3 }
 0x512   : > { %v2209_v10 = vadd.f32 %v2208_v3, %v2104_v23 }
 0x513   : > { %2560 = vst.msk [vmem:[%s3598_s7 + $0x80] sm:$0xff] %vm1608_vm6, %v2528_v62  ;;  %2724 = vmatmul.msk.bf16.gmra.mxu3 %vm1599_vm5, %v1977_v59  ;;  %2745 = vmatmul.msk.bf16.gmra.mxu0 %vm1599_vm5, %v1977_v59 }
 0x514   : > { %v2406_v30 = vpop.f32.mrf.mxu1  ;;  %2766 = vmatmul.msk.bf16.gmra.mxu1 %vm1599_vm5, %v1977_v59  ;;  %v2215_v16 = vpop.f32.mrf.mxu0 }
 0x515   : > { %v2461_v45 = vadd.f32 %v2406_v30, %v2206_v63 }
 0x517   : > { %v2497_v4 = vadd.f32 %v3587_v25, %v2461_v45 }
 0x518   : > { %v1961_v12 = vld [vmem:[#allocation3 + $0xf8] sm:$0xff] }
 0x519   : > { %v2529_v0 = vmax.f32 %v2497_v4, 0.0  ;;  %v2106_v15 = vpop.f32.mrf.mxu3 }
 0x51a   : > { %v2211_v24 = vadd.f32 %v2210_v22, %v2106_v15 }
 0x51b   : > { %2561 = vst.msk [vmem:[%s3598_s7 + $0x88] sm:$0xff] %vm1608_vm6, %v2529_v0 }
 0x51d   : > { %v2218_v55 = vpop.f32.mrf.mxu0 }
 0x51e   : > { %v2409_v19 = vpop.f32.mrf.mxu1 }
 0x51f   : > { %v2462_v11 = vadd.f32 %v2409_v19, %v2209_v10 }
 0x521   : > { %v2498_v14 = vadd.f32 %v3587_v25, %v2462_v11  ;;  %v2802_v11 = vld [vmem:[%s3888_s4] ss:$0 sm:$0xff] }
 0x523   : > { %v2530_v21 = vmax.f32 %v2498_v14, 0.0  ;;  %v2109_v31 = vpop.f32.mrf.mxu3 }
 0x524   : > { %v2214_v27 = vadd.f32 %v2213_v50, %v2109_v31 }
 0x525   : > { %2562 = vst.msk [vmem:[%s3598_s7 + $0x90] sm:$0xff] %vm1608_vm6, %v2530_v21  ;;  %v2220_v54 = vpop.f32.mrf.mxu0 }
 0x526   : > { %v2411_v13 = vpop.f32.mrf.mxu1 }
 0x527   : > { %v2463_v53 = vadd.f32 %v2411_v13, %v2211_v24 }
 0x529   : > { %v2499_v41 = vadd.f32 %v3587_v25, %v2463_v53 }
 0x52b   : > { %v2531_v44 = vmax.f32 %v2499_v41, 0.0  ;;  %v2111_v36 = vpop.f32.mrf.mxu3 }
 0x52c   : > { %v2216_v46 = vadd.f32 %v2215_v16, %v2111_v36 }
 0x52d   : > { %2563 = vst.msk [vmem:[%s3598_s7 + $0x98] sm:$0xff] %vm1608_vm6, %v2531_v44 }
 0x536   : > { %v1734_v2 = vpop.permute.xlu2 %1733 }
 0x537   : > { %1800 = vst.msk [vmem:[#allocation3 + $0x108] sm:$0xff] %vm1769_vm8, %v1734_v2 }
 0x53e   : > { %v1736_v58 = vpop.permute.xlu2 %1735 }
 0x53f   : > { %1801 = vst.msk [vmem:[#allocation3 + $0x110] sm:$0xff] %vm1769_vm8, %v1736_v58 }
 0x54e   : > { %v1863_v42 = vpop.permute.xlu1 %1862 }
 0x54f   : > { %1929 = vst.msk [vmem:[#allocation3 + $0x107] sm:$0xff] %vm1898_vm9, %v1863_v42 }
 0x555   : > { %v1865_v28 = vpop.permute.xlu0 %1864 }
 0x556   : > { %1930 = vst.msk [vmem:[#allocation3 + $0x10f] sm:$0xff] %vm1898_vm9, %v1865_v28  ;;  %v1962_v6 = vld [vmem:[#allocation3 + $0x100] sm:$0xff] }
 0x557   : > { %v1978_v37 = vpack.c.bf16 %v1962_v6, %v1961_v12 }
 0x559   : > { %2725 = vmatmul.msk.bf16.gmra.mxu3 %vm1599_vm5, %v1978_v37  ;;  %2746 = vmatmul.msk.bf16.gmra.mxu0 %vm1599_vm5, %v1978_v37 }
 0x55a   : > { %2767 = vmatmul.msk.bf16.gmra.mxu1 %vm1599_vm5, %v1978_v37 }
 0x55d   : > { %v1982_v20 = vld [vmem:[#allocation3 + $0x108] sm:$0xff]  ;;  %v1983_v32 = vld [vmem:[#allocation3 + $0x110] sm:$0xff] }
 0x55e   : > { %v1984_v33 = vpack.c.bf16 %v1983_v32, %v1982_v20 }
 0x562   : > { %v2414_v9 = vpop.f32.mrf.mxu1  ;;  %v2223_v59 = vpop.f32.mrf.mxu0 }
 0x563   : > { %v2464_v5 = vadd.f32 %v2414_v9, %v2214_v27 }
 0x565   : > { %v2500_v34 = vadd.f32 %v3587_v25, %v2464_v5 }
 0x567   : > { %v2532_v43 = vmax.f32 %v2500_v34, 0.0  ;;  %v2114_v26 = vpop.f32.mrf.mxu3 }
 0x568   : > { %v2219_v49 = vadd.f32 %v2218_v55, %v2114_v26 }
 0x569   : > { %2564 = vst.msk [vmem:[%s3598_s7 + $0xa0] sm:$0xff] %vm1608_vm6, %v2532_v43  ;;  %2726 = vmatmul.msk.bf16.gmra.mxu3 %vm1599_vm5, %v1984_v33 }
 0x56a   : > { %v2416_v47 = vpop.f32.mrf.mxu1  ;;  %2768 = vmatmul.msk.bf16.gmra.mxu1 %vm1599_vm5, %v1984_v33  ;;  %v2225_v0 = vpop.f32.mrf.mxu0 }
 0x56b   : > { %v2465_v52 = vadd.f32 %v2416_v47, %v2216_v46 }
 0x56d   : > { %v2501_v7 = vadd.f32 %v3587_v25, %v2465_v52 }
 0x56f   : > { %v2533_v38 = vmax.f32 %v2501_v7, 0.0  ;;  %v2116_v56 = vpop.f32.mrf.mxu3 }
 0x570   : > { %v2221_v61 = vadd.f32 %v2220_v54, %v2116_v56 }
 0x571   : > { %2565 = vst.msk [vmem:[%s3598_s7 + $0xa8] sm:$0xff] %vm1608_vm6, %v2533_v38 }
 0x578   : > { %v2228_v22 = vpop.f32.mrf.mxu0 }
 0x579   : > { %v2419_v57 = vpop.f32.mrf.mxu1 }
 0x57a   : > { %2769 = vmatmul.msk.bf16.gmra.mxu1 %vm1599_vm5, %v2290_v39  ;;  %v2466_v51 = vadd.f32 %v2419_v57, %v2219_v49 }
 0x57c   : > { %v2502_v29 = vadd.f32 %v3587_v25, %v2466_v51 }
 0x57e   : > { %v2534_v60 = vmax.f32 %v2502_v29, 0.0  ;;  %v2119_v62 = vpop.f32.mrf.mxu3 }
 0x57f   : > { %v2224_v18 = vadd.f32 %v2223_v59, %v2119_v62 }
 0x580   : > { %2566 = vst.msk [vmem:[%s3598_s7 + $0xb0] sm:$0xff] %vm1608_vm6, %v2534_v60  ;;  %v2230_v41 = vpop.f32.mrf.mxu0 }
 0x581   : > { %v2421_v35 = vpop.f32.mrf.mxu1 }
 0x582   : > { %v2467_v1 = vadd.f32 %v2421_v35, %v2221_v61 }
 0x584   : > { %v2503_v40 = vadd.f32 %v3587_v25, %v2467_v1 }
 0x586   : > { %v2535_v48 = vmax.f32 %v2503_v40, 0.0  ;;  %v2121_v4 = vpop.f32.mrf.mxu3 }
 0x587   : > { %v2226_v3 = vadd.f32 %v2225_v0, %v2121_v4 }
 0x588   : > { %2567 = vst.msk [vmem:[%s3598_s7 + $0xb8] sm:$0xff] %vm1608_vm6, %v2535_v48 }
 0x590   : > { %v2233_v6 = vpop.f32.mrf.mxu0 }
 0x591   : > { %v2424_v63 = vpop.f32.mrf.mxu1 }
 0x592   : > { %v2468_v30 = vadd.f32 %v2424_v63, %v2224_v18 }
 0x594   : > { %v2504_v45 = vadd.f32 %v3587_v25, %v2468_v30 }
 0x596   : > { %v2536_v23 = vmax.f32 %v2504_v45, 0.0  ;;  %v2124_v21 = vpop.f32.mrf.mxu3 }
 0x597   : > { %v2229_v24 = vadd.f32 %v2228_v22, %v2124_v21 }
 0x598   : > { %2568 = vst.msk [vmem:[%s3598_s7 + $0xc0] sm:$0xff] %vm1608_vm6, %v2536_v23  ;;  %v2235_v32 = vpop.f32.mrf.mxu0 }
 0x599   : > { %v2426_v10 = vpop.f32.mrf.mxu1 }
 0x59a   : > { %v2469_v19 = vadd.f32 %v2426_v10, %v2226_v3 }
 0x59c   : > { %v2505_v14 = vadd.f32 %v2802_v11, %v2469_v19 }
 0x59e   : > { %v2537_v15 = vmax.f32 %v2505_v14, 0.0  ;;  %v2126_v25 = vpop.f32.mrf.mxu3 }
 0x59f   : > { %v2231_v42 = vadd.f32 %v2230_v41, %v2126_v25 }
 0x5a0   : > { %2569 = vst.msk [vmem:[%s3598_s7 + $0xc8] sm:$0xff] %vm1608_vm6, %v2537_v15 }
 0x5d6   : > { %v2238_v47 = vpop.f32.mrf.mxu0 }
 0x5d7   : > { %v2429_v13 = vpop.f32.mrf.mxu1 }
 0x5d8   : > { %v2470_v53 = vadd.f32 %v2429_v13, %v2229_v24 }
 0x5da   : > { %v2506_v44 = vadd.f32 %v2802_v11, %v2470_v53 }
 0x5dc   : > { %v2538_v2 = vmax.f32 %v2506_v44, 0.0  ;;  %v2129_v58 = vpop.f32.mrf.mxu3 }
 0x5dd   : > { %v2234_v50 = vadd.f32 %v2233_v6, %v2129_v58 }
 0x5de   : > { %2570 = vst.msk [vmem:[%s3598_s7 + $0xd0] sm:$0xff] %vm1608_vm6, %v2538_v2  ;;  %v2240_v39 = vpop.f32.mrf.mxu0 }
 0x5df   : > { %v2431_v28 = vpop.f32.mrf.mxu1 }
 0x5e0   : > { %v2471_v12 = vadd.f32 %v2431_v28, %v2231_v42 }
 0x5e2   : > { %v2507_v37 = vadd.f32 %v2802_v11, %v2471_v12 }
 0x5e4   : > { %v2539_v31 = vmax.f32 %v2507_v37, 0.0  ;;  %v2131_v27 = vpop.f32.mrf.mxu3 }
 0x5e5   : > { %v2236_v36 = vadd.f32 %v2235_v32, %v2131_v27 }
 0x5e6   : > { %2571 = vst.msk [vmem:[%s3598_s7 + $0xd8] sm:$0xff] %vm1608_vm6, %v2539_v31 }
 0x5e7   : > { %v2434_v9 = vpop.f32.mrf.mxu1 }
 0x5e8   : > { %v2472_v5 = vadd.f32 %v2434_v9, %v2234_v50 }
 0x5ea   : > { %v2508_v20 = vadd.f32 %v2802_v11, %v2472_v5 }
 0x5ec   : > { %v2540_v34 = vmax.f32 %v2508_v20, 0.0  ;;  %v2134_v16 = vpop.f32.mrf.mxu3 }
 0x5ed   : > { %v2239_v7 = vadd.f32 %v2238_v47, %v2134_v16 }
 0x5ee   : > { %2572 = vst.msk [vmem:[%s3598_s7 + $0xe0] sm:$0xff] %vm1608_vm6, %v2540_v34 }
 0x5ef   : > { %v2436_v43 = vpop.f32.mrf.mxu1 }
 0x5f0   : > { %v2473_v33 = vadd.f32 %v2436_v43, %v2236_v36 }
 0x5f2   : > { %v2509_v46 = vadd.f32 %v2802_v11, %v2473_v33 }
 0x5f4   : > { %v2541_v52 = vmax.f32 %v2509_v46, 0.0  ;;  %v2136_v8 = vpop.f32.mrf.mxu3 }
 0x5f5   : > { %v2241_v49 = vadd.f32 %v2240_v39, %v2136_v8 }
 0x5f6   : > { %2573 = vst.msk [vmem:[%s3598_s7 + $0xe8] sm:$0xff] %vm1608_vm6, %v2541_v52 }
 0x5f7   : > { %v2439_v38 = vpop.f32.mrf.mxu1 }
 0x5f8   : > { %v2474_v26 = vadd.f32 %v2439_v38, %v2239_v7 }
 0x5fa   : > { %v2510_v17 = vadd.f32 %v2802_v11, %v2474_v26 }
 0x5fc   : > { %v2542_v55 = vmax.f32 %v2510_v17, 0.0 }
 0x5fe   : > { %2574 = vst.msk [vmem:[%s3598_s7 + $0xf0] sm:$0xff] %vm1608_vm6, %v2542_v55 }
 0x5ff   : > { %v2441_v57 = vpop.f32.mrf.mxu1 }
 0x600   : > { %v2475_v51 = vadd.f32 %v2441_v57, %v2241_v49 }
 0x602   : > { %v2511_v29 = vadd.f32 %v2802_v11, %v2475_v51 }
 0x604   : > { %v2543_v56 = vmax.f32 %v2511_v29, 0.0 }
 0x606   : > { %2575 = vst.msk [vmem:[%s3598_s7 + $0xf8] sm:$0xff] %vm1608_vm6, %v2543_v56 }
 0x607 PF: > { %s16_s21 = sadd.s32 1, %s2809_s21  }
 0x608   : > { %p13_p4 = scmp.ge.s32.totalorder %s16_s21, 4  }
 0x60a   :  { %15 = sbr.rel (!%p13_p4) target bundleno = 1 (0x1), region = 78 }

</bundles_post_ra>
